<compile_context>
chip_gen: v5e
topology: v5e:2x2
jax: 0.10.0
libtpu: 0.0.40
codegen_flags: <defaults>
</compile_context>

<pallas_src>
import jax
import jax.numpy as jnp
from jax.experimental import pallas as pl
from jax.experimental.pallas import tpu as pltpu


def gru_kernel(gi_ref, whh_ref, bhn_ref, hs_ref, h_scr):
    """One grid step processes TT timesteps of the GRU recurrence.

    gi_ref : [TT, Bp, 3*Hp] f32   precomputed input projection, gates laid out
                                  [r | z | n] at Hp-aligned lane offsets, with
                                  b_ih and b_hh_{r,z} already folded in.
    whh_ref: [Hp, 3*Hp]     bf16  fused W_hh^T (input-dim x gate-major output).
    bhn_ref: [1, Hp]        f32   b_hh for the n gate (cannot be folded: sits
                                  inside the r * (...) product).
    hs_ref : [TT, Bp, Hp]   f32   hidden state for every timestep.
    h_scr  : [Bp, Hp]       f32   hidden state carried across grid steps.
    """
    @pl.when(pl.program_id(0) == 0)
    def _():
        # init_h(): zeros(num_layers * num_directions, batch, hidden)
        h_scr[...] = jnp.zeros_like(h_scr)

    tt = gi_ref.shape[0]
    hp = hs_ref.shape[-1]
    bhn = bhn_ref[...]                         # [1, Hp] (hoisted out of loop)

    def step(t, h):
        gi_t = gi_ref[t]                       # [Bp, 3*Hp] f32
        h_b = h.astype(jnp.bfloat16)
        # Single fused h-projection on the serial path (bf16 MXU, f32 accumulate).
        gh = jnp.dot(h_b, whh_ref[...], preferred_element_type=jnp.float32)
        # PyTorch GRU gate order: r, z, n — lane slices at 128-aligned offsets.
        r = jax.nn.sigmoid(gi_t[:, 0 * hp:1 * hp] + gh[:, 0 * hp:1 * hp])
        z = jax.nn.sigmoid(gi_t[:, 1 * hp:2 * hp] + gh[:, 1 * hp:2 * hp])
        n = jnp.tanh(gi_t[:, 2 * hp:3 * hp] + r * (gh[:, 2 * hp:3 * hp] + bhn))
        h_new = (1.0 - z) * n + z * h
        hs_ref[t] = h_new.astype(hs_ref.dtype)
        return h_new

    h_final = jax.lax.fori_loop(0, tt, step, h_scr[...], unroll=True)
    h_scr[...] = h_final


def gru_encode(x_tbe, w_ih, w_hh, b_ih, b_hh, *, tt=8):
    """Single-layer unidirectional GRU encoder.

    x_tbe: [T, B, E] f32 (time-major embedded tokens)
    w_ih : [3H, E], w_hh: [3H, H], b_ih/b_hh: [3H]  (PyTorch GRU parameter shapes)
    Returns hs [T, B, H] and h_last [1, B, H] (num_layers*num_directions = 1).
    """
    T, B, E = x_tbe.shape
    H = w_hh.shape[1]

    # Fold b_ih (all gates) + b_hh (r and z only) into the hoisted projection.
    bias_fold = b_ih + b_hh.at[2 * H:].set(0.0)        # [3H]

    # --- hoisted input projection for all T timesteps (one tall bf16 matmul) ---
    gi = (
        jnp.einsum(
            "tbe,ge->tbg",
            x_tbe.astype(jnp.bfloat16),
            w_ih.astype(jnp.bfloat16),
            preferred_element_type=jnp.float32,
        )
        + bias_fold[None, None, :]
    )                                                   # [T, B, 3H] f32

    # --- pad to TPU-friendly shapes: B -> x8 (sublane), H -> x128 (lane), T -> xTT
    Tp = pl.cdiv(T, tt) * tt
    Bp = pl.cdiv(B, 8) * 8
    Hp = pl.cdiv(H, 128) * 128

    # Gate blocks go to Hp-aligned lane offsets so in-kernel slices never cut a vreg.
    gi_p = jnp.zeros((Tp, Bp, 3 * Hp), jnp.float32)
    whh_p = jnp.zeros((Hp, 3 * Hp), jnp.bfloat16)
    w_hh_t = w_hh.T                                     # [H, 3H]
    for g in range(3):
        gi_p = gi_p.at[:T, :B, g * Hp:g * Hp + H].set(gi[:, :, g * H:(g + 1) * H])
        whh_p = whh_p.at[:H, g * Hp:g * Hp + H].set(
            w_hh_t[:, g * H:(g + 1) * H].astype(jnp.bfloat16)
        )
    bhn_p = jnp.zeros((1, Hp), jnp.float32).at[0, :H].set(b_hh[2 * H:])

    hs_p = pl.pallas_call(
        gru_kernel,
        out_shape=jax.ShapeDtypeStruct((Tp, Bp, Hp), jnp.float32),
        grid_spec=pltpu.PrefetchScalarGridSpec(
            num_scalar_prefetch=0,
            grid=(Tp // tt,),
            in_specs=[
                pl.BlockSpec((tt, Bp, 3 * Hp), lambda i: (i, 0, 0)),   # gi block
                pl.BlockSpec((Hp, 3 * Hp), lambda i: (0, 0)),          # fused W_hh^T (resident, bf16)
                pl.BlockSpec((1, Hp), lambda i: (0, 0)),               # b_hh (n gate)
            ],
            out_specs=pl.BlockSpec((tt, Bp, Hp), lambda i: (i, 0, 0)), # hs block
            scratch_shapes=[pltpu.VMEM((Bp, Hp), jnp.float32)],        # carried hidden
        ),
        compiler_params=pltpu.CompilerParams(
            # time axis is a true recurrence -> serial
            dimension_semantics=("arbitrary",),
        ),
    )(gi_p, whh_p, bhn_p)

    hs = hs_p[:T, :B, :H]
    h_last = hs[T - 1][None]            # [1, B, H] == init_h shape
    return hs, h_last


def gru_encode_ref(x_tbe, w_ih, w_hh, b_ih, b_hh):
    """Pure-JAX f32 reference (PyTorch GRU semantics)."""
    T, B, E = x_tbe.shape
    H = w_hh.shape[1]
    w_ih_t = w_ih.T                     # [E, 3H]
    w_hh_t = w_hh.T                     # [H, 3H]

    def step(h, x):
        gi = x @ w_ih_t + b_ih
        gh = h @ w_hh_t + b_hh
        i_r, i_z, i_n = gi[:, :H], gi[:, H:2 * H], gi[:, 2 * H:]
        h_r, h_z, h_n = gh[:, :H], gh[:, H:2 * H], gh[:, 2 * H:]
        r = jax.nn.sigmoid(i_r + h_r)
        z = jax.nn.sigmoid(i_z + h_z)
        n = jnp.tanh(i_n + r * h_n)
        h_new = (1.0 - z) * n + z * h
        return h_new, h_new

    h0 = jnp.zeros((B, H), jnp.float32)
    h_last, hs = jax.lax.scan(step, h0, x_tbe)
    return hs, h_last[None]


if __name__ == "__main__":
    key = jax.random.PRNGKey(0)
    batch, seq_len = 2, 8
    vocab, embed, hidden = 64, 32, 32

    k_emb, k_wih, k_whh, k_bih, k_bhh, k_tok = jax.random.split(key, 6)

    # Deterministic synthetic parameters (PyTorch GRU shapes: W_ih [3H,E], W_hh [3H,H])
    embedding = jax.random.normal(k_emb, (vocab, embed), jnp.float32) * 0.1
    w_ih = jax.random.normal(k_wih, (3 * hidden, embed), jnp.float32) * 0.1
    w_hh = jax.random.normal(k_whh, (3 * hidden, hidden), jnp.float32) * 0.1
    b_ih = jax.random.normal(k_bih, (3 * hidden,), jnp.float32) * 0.1
    b_hh = jax.random.normal(k_bhh, (3 * hidden,), jnp.float32) * 0.1

    # inputs: [batch_size, seq_len] token ids
    tokens = jax.random.randint(k_tok, (batch, seq_len), 0, vocab)

    # Glue: embedding lookup + transpose to time-major [T, B, E]
    x = embedding[tokens]                       # [B, T, E]
    x_tbe = jnp.transpose(x, (1, 0, 2))         # [T, B, E]

    hs, h_last = gru_encode(x_tbe, w_ih, w_hh, b_ih, b_hh, tt=8)
    hs = jax.block_until_ready(hs)
    h_last = jax.block_until_ready(h_last)

    hs_ref, h_last_ref = gru_encode_ref(x_tbe, w_ih, w_hh, b_ih, b_hh)
    # bf16 matmul operands (f32 accumulate) vs f32 reference -> loosened tolerance.
    assert jnp.allclose(hs, hs_ref, atol=2e-2), "hidden states mismatch"
    assert jnp.allclose(h_last, h_last_ref, atol=2e-2), "final hidden mismatch"
    assert hs.shape == (seq_len, batch, hidden)
    assert h_last.shape == (1, batch, hidden)

    print("KERNEL_OK")
</pallas_src>

<mosaic_0001>
module attributes {stable_mosaic.version = 11 : i64} {
  func.func @gru_kernel(%arg0: i32, %arg1: memref<8x8x384xf32, #tpu.memory_space<vmem>>, %arg2: memref<128x384xbf16, #tpu.memory_space<vmem>>, %arg3: memref<1x128xf32, #tpu.memory_space<vmem>>, %arg4: memref<8x8x128xf32, #tpu.memory_space<vmem>>, %arg5: memref<8x128xf32, #tpu.memory_space<vmem>>) attributes {dimension_semantics = [#tpu.dimension_semantics<arbitrary>], iteration_bounds = array<i64: 1>, scalar_prefetch = 0 : i64, scratch_operands = 1 : i64, tpu.core_type = #tpu.core_type<tc>, window_params = [{transform_indices = @transform_0, window_bounds = array<i64: 8, 8, 384>}, {pipeline_mode = #tpu.pipeline_mode<synchronous>, transform_indices = @transform_1, window_bounds = array<i64: 128, 384>}, {pipeline_mode = #tpu.pipeline_mode<synchronous>, transform_indices = @transform_2, window_bounds = array<i64: 1, 128>}, {transform_indices = @transform_3, window_bounds = array<i64: 8, 8, 128>}]} {
    %c0_i32 = arith.constant 0 : i32
    %0 = arith.cmpi eq, %arg0, %c0_i32 : i32
    %1 = arith.extui %0 : i1 to i32
    %c0_i32_0 = arith.constant 0 : i32
    %2 = arith.cmpi ne, %1, %c0_i32_0 : i32
    scf.if %2 {
      %cst_86 = arith.constant 0.000000e+00 : f32
      %310 = vector.broadcast %cst_86 : f32 to vector<8x128xf32>
      %c0_87 = arith.constant 0 : index
      %c0_88 = arith.constant 0 : index
      %311 = vector.load %arg5[%c0_87, %c0_88] : memref<8x128xf32, #tpu.memory_space<vmem>>, vector<8x128xf32>
      tpu.vector_store %arg5[%c0_87, %c0_88], %310 {strides = array<i32>} : memref<8x128xf32, #tpu.memory_space<vmem>>, vector<8x128xf32>,
    } else {
    }
    %c0 = arith.constant 0 : index
    %c0_1 = arith.constant 0 : index
    %3 = vector.load %arg3[%c0, %c0_1] : memref<1x128xf32, #tpu.memory_space<vmem>>, vector<1x128xf32>
    %c0_2 = arith.constant 0 : index
    %c0_3 = arith.constant 0 : index
    %4 = vector.load %arg5[%c0_2, %c0_3] : memref<8x128xf32, #tpu.memory_space<vmem>>, vector<8x128xf32>
    %c0_i32_4 = arith.constant 0 : i32
    %5 = arith.index_cast %c0_i32_4 : i32 to index
    %c0_5 = arith.constant 0 : index
    %c0_6 = arith.constant 0 : index
    %6 = vector.load %arg1[%5, %c0_5, %c0_6] : memref<8x8x384xf32, #tpu.memory_space<vmem>>, vector<1x8x384xf32>
    %7 = vector.shape_cast %6 : vector<1x8x384xf32> to vector<8x384xf32>
    %8 = arith.truncf %4 : vector<8x128xf32> to vector<8x128xbf16>
    %c0_7 = arith.constant 0 : index
    %c0_8 = arith.constant 0 : index
    %9 = vector.load %arg2[%c0_7, %c0_8] : memref<128x384xbf16, #tpu.memory_space<vmem>>, vector<128x384xbf16>
    %cst = arith.constant dense<0.000000e+00> : vector<8x384xf32>
    %10 = tpu.matmul %8, %9, %cst {dimension_numbers = #tpu.dot_dimension_numbers<[1], [0], [0], [1], [0, 0, 1, 1], [], []>} : vector<8x128xbf16>, vector<128x384xbf16>, vector<8x384xf32> -> vector<8x384xf32>
    %11 = vector.extract_strided_slice %7 {offsets = [0, 0], sizes = [8, 128], strides = [1, 1]} : vector<8x384xf32> to vector<8x128xf32>
    %12 = vector.extract_strided_slice %10 {offsets = [0, 0], sizes = [8, 128], strides = [1, 1]} : vector<8x384xf32> to vector<8x128xf32>
    %13 = arith.addf %11, %12 : vector<8x128xf32>
    %14 = arith.negf %13 : vector<8x128xf32>
    %15 = math.exp %14 : vector<8x128xf32>
    %cst_9 = arith.constant 1.000000e+00 : f32
    %16 = vector.broadcast %cst_9 : f32 to vector<8x128xf32>
    %17 = arith.addf %16, %15 : vector<8x128xf32>
    %18 = arith.divf %16, %17 : vector<8x128xf32>
    %19 = vector.extract_strided_slice %7 {offsets = [0, 128], sizes = [8, 128], strides = [1, 1]} : vector<8x384xf32> to vector<8x128xf32>
    %20 = vector.extract_strided_slice %10 {offsets = [0, 128], sizes = [8, 128], strides = [1, 1]} : vector<8x384xf32> to vector<8x128xf32>
    %21 = arith.addf %19, %20 : vector<8x128xf32>
    %22 = arith.negf %21 : vector<8x128xf32>
    %23 = math.exp %22 : vector<8x128xf32>
    %cst_10 = arith.constant 1.000000e+00 : f32
    %24 = vector.broadcast %cst_10 : f32 to vector<8x128xf32>
    %25 = arith.addf %24, %23 : vector<8x128xf32>
    %26 = arith.divf %24, %25 : vector<8x128xf32>
    %27 = vector.extract_strided_slice %7 {offsets = [0, 256], sizes = [8, 128], strides = [1, 1]} : vector<8x384xf32> to vector<8x128xf32>
    %28 = vector.extract_strided_slice %10 {offsets = [0, 256], sizes = [8, 128], strides = [1, 1]} : vector<8x384xf32> to vector<8x128xf32>
    %29 = vector.broadcast %3 : vector<1x128xf32> to vector<8x128xf32>
    %30 = arith.addf %28, %29 : vector<8x128xf32>
    %31 = arith.mulf %18, %30 : vector<8x128xf32>
    %32 = arith.addf %27, %31 : vector<8x128xf32>
    %33 = math.tanh %32 : vector<8x128xf32>
    %cst_11 = arith.constant 1.000000e+00 : f32
    %34 = vector.broadcast %cst_11 : f32 to vector<8x128xf32>
    %35 = arith.subf %34, %26 : vector<8x128xf32>
    %36 = arith.mulf %35, %33 : vector<8x128xf32>
    %37 = arith.mulf %26, %4 : vector<8x128xf32>
    %38 = arith.addf %36, %37 : vector<8x128xf32>
    %39 = arith.index_cast %c0_i32_4 : i32 to index
    %c0_12 = arith.constant 0 : index
    %c0_13 = arith.constant 0 : index
    %40 = vector.load %arg4[%39, %c0_12, %c0_13] : memref<8x8x128xf32, #tpu.memory_space<vmem>>, vector<1x8x128xf32>
    %41 = vector.shape_cast %40 : vector<1x8x128xf32> to vector<8x128xf32>
    %42 = vector.shape_cast %38 : vector<8x128xf32> to vector<1x8x128xf32>
    tpu.vector_store %arg4[%39, %c0_12, %c0_13], %42 {strides = array<i32>} : memref<8x8x128xf32, #tpu.memory_space<vmem>>, vector<1x8x128xf32>,
    %c1_i32 = arith.constant 1 : i32
    %43 = arith.index_cast %c1_i32 : i32 to index
    %c0_14 = arith.constant 0 : index
    %c0_15 = arith.constant 0 : index
    %44 = vector.load %arg1[%43, %c0_14, %c0_15] : memref<8x8x384xf32, #tpu.memory_space<vmem>>, vector<1x8x384xf32>
    %45 = vector.shape_cast %44 : vector<1x8x384xf32> to vector<8x384xf32>
    %46 = arith.truncf %38 : vector<8x128xf32> to vector<8x128xbf16>
    %c0_16 = arith.constant 0 : index
    %c0_17 = arith.constant 0 : index
    %47 = vector.load %arg2[%c0_16, %c0_17] : memref<128x384xbf16, #tpu.memory_space<vmem>>, vector<128x384xbf16>
    %cst_18 = arith.constant dense<0.000000e+00> : vector<8x384xf32>
    %48 = tpu.matmul %46, %47, %cst_18 {dimension_numbers = #tpu.dot_dimension_numbers<[1], [0], [0], [1], [0, 0, 1, 1], [], []>} : vector<8x128xbf16>, vector<128x384xbf16>, vector<8x384xf32> -> vector<8x384xf32>
    %49 = vector.extract_strided_slice %45 {offsets = [0, 0], sizes = [8, 128], strides = [1, 1]} : vector<8x384xf32> to vector<8x128xf32>
    %50 = vector.extract_strided_slice %48 {offsets = [0, 0], sizes = [8, 128], strides = [1, 1]} : vector<8x384xf32> to vector<8x128xf32>
    %51 = arith.addf %49, %50 : vector<8x128xf32>
    %52 = arith.negf %51 : vector<8x128xf32>
    %53 = math.exp %52 : vector<8x128xf32>
    %cst_19 = arith.constant 1.000000e+00 : f32
    %54 = vector.broadcast %cst_19 : f32 to vector<8x128xf32>
    %55 = arith.addf %54, %53 : vector<8x128xf32>
    %56 = arith.divf %54, %55 : vector<8x128xf32>
    %57 = vector.extract_strided_slice %45 {offsets = [0, 128], sizes = [8, 128], strides = [1, 1]} : vector<8x384xf32> to vector<8x128xf32>
    %58 = vector.extract_strided_slice %48 {offsets = [0, 128], sizes = [8, 128], strides = [1, 1]} : vector<8x384xf32> to vector<8x128xf32>
    %59 = arith.addf %57, %58 : vector<8x128xf32>
    %60 = arith.negf %59 : vector<8x128xf32>
    %61 = math.exp %60 : vector<8x128xf32>
    %cst_20 = arith.constant 1.000000e+00 : f32
    %62 = vector.broadcast %cst_20 : f32 to vector<8x128xf32>
    %63 = arith.addf %62, %61 : vector<8x128xf32>
    %64 = arith.divf %62, %63 : vector<8x128xf32>
    %65 = vector.extract_strided_slice %45 {offsets = [0, 256], sizes = [8, 128], strides = [1, 1]} : vector<8x384xf32> to vector<8x128xf32>
    %66 = vector.extract_strided_slice %48 {offsets = [0, 256], sizes = [8, 128], strides = [1, 1]} : vector<8x384xf32> to vector<8x128xf32>
    %67 = vector.broadcast %3 : vector<1x128xf32> to vector<8x128xf32>
    %68 = arith.addf %66, %67 : vector<8x128xf32>
    %69 = arith.mulf %56, %68 : vector<8x128xf32>
    %70 = arith.addf %65, %69 : vector<8x128xf32>
    %71 = math.tanh %70 : vector<8x128xf32>
    %cst_21 = arith.constant 1.000000e+00 : f32
    %72 = vector.broadcast %cst_21 : f32 to vector<8x128xf32>
    %73 = arith.subf %72, %64 : vector<8x128xf32>
    %74 = arith.mulf %73, %71 : vector<8x128xf32>
    %75 = arith.mulf %64, %38 : vector<8x128xf32>
    %76 = arith.addf %74, %75 : vector<8x128xf32>
    %77 = arith.index_cast %c1_i32 : i32 to index
    %c0_22 = arith.constant 0 : index
    %c0_23 = arith.constant 0 : index
    %78 = vector.load %arg4[%77, %c0_22, %c0_23] : memref<8x8x128xf32, #tpu.memory_space<vmem>>, vector<1x8x128xf32>
    %79 = vector.shape_cast %78 : vector<1x8x128xf32> to vector<8x128xf32>
    %80 = vector.shape_cast %76 : vector<8x128xf32> to vector<1x8x128xf32>
    tpu.vector_store %arg4[%77, %c0_22, %c0_23], %80 {strides = array<i32>} : memref<8x8x128xf32, #tpu.memory_space<vmem>>, vector<1x8x128xf32>,
    %c2_i32 = arith.constant 2 : i32
    %81 = arith.index_cast %c2_i32 : i32 to index
    %c0_24 = arith.constant 0 : index
    %c0_25 = arith.constant 0 : index
    %82 = vector.load %arg1[%81, %c0_24, %c0_25] : memref<8x8x384xf32, #tpu.memory_space<vmem>>, vector<1x8x384xf32>
    %83 = vector.shape_cast %82 : vector<1x8x384xf32> to vector<8x384xf32>
    %84 = arith.truncf %76 : vector<8x128xf32> to vector<8x128xbf16>
    %c0_26 = arith.constant 0 : index
    %c0_27 = arith.constant 0 : index
    %85 = vector.load %arg2[%c0_26, %c0_27] : memref<128x384xbf16, #tpu.memory_space<vmem>>, vector<128x384xbf16>
    %cst_28 = arith.constant dense<0.000000e+00> : vector<8x384xf32>
    %86 = tpu.matmul %84, %85, %cst_28 {dimension_numbers = #tpu.dot_dimension_numbers<[1], [0], [0], [1], [0, 0, 1, 1], [], []>} : vector<8x128xbf16>, vector<128x384xbf16>, vector<8x384xf32> -> vector<8x384xf32>
    %87 = vector.extract_strided_slice %83 {offsets = [0, 0], sizes = [8, 128], strides = [1, 1]} : vector<8x384xf32> to vector<8x128xf32>
    %88 = vector.extract_strided_slice %86 {offsets = [0, 0], sizes = [8, 128], strides = [1, 1]} : vector<8x384xf32> to vector<8x128xf32>
    %89 = arith.addf %87, %88 : vector<8x128xf32>
    %90 = arith.negf %89 : vector<8x128xf32>
    %91 = math.exp %90 : vector<8x128xf32>
    %cst_29 = arith.constant 1.000000e+00 : f32
    %92 = vector.broadcast %cst_29 : f32 to vector<8x128xf32>
    %93 = arith.addf %92, %91 : vector<8x128xf32>
    %94 = arith.divf %92, %93 : vector<8x128xf32>
    %95 = vector.extract_strided_slice %83 {offsets = [0, 128], sizes = [8, 128], strides = [1, 1]} : vector<8x384xf32> to vector<8x128xf32>
    %96 = vector.extract_strided_slice %86 {offsets = [0, 128], sizes = [8, 128], strides = [1, 1]} : vector<8x384xf32> to vector<8x128xf32>
    %97 = arith.addf %95, %96 : vector<8x128xf32>
    %98 = arith.negf %97 : vector<8x128xf32>
    %99 = math.exp %98 : vector<8x128xf32>
    %cst_30 = arith.constant 1.000000e+00 : f32
    %100 = vector.broadcast %cst_30 : f32 to vector<8x128xf32>
    %101 = arith.addf %100, %99 : vector<8x128xf32>
    %102 = arith.divf %100, %101 : vector<8x128xf32>
    %103 = vector.extract_strided_slice %83 {offsets = [0, 256], sizes = [8, 128], strides = [1, 1]} : vector<8x384xf32> to vector<8x128xf32>
    %104 = vector.extract_strided_slice %86 {offsets = [0, 256], sizes = [8, 128], strides = [1, 1]} : vector<8x384xf32> to vector<8x128xf32>
    %105 = vector.broadcast %3 : vector<1x128xf32> to vector<8x128xf32>
    %106 = arith.addf %104, %105 : vector<8x128xf32>
    %107 = arith.mulf %94, %106 : vector<8x128xf32>
    %108 = arith.addf %103, %107 : vector<8x128xf32>
    %109 = math.tanh %108 : vector<8x128xf32>
    %cst_31 = arith.constant 1.000000e+00 : f32
    %110 = vector.broadcast %cst_31 : f32 to vector<8x128xf32>
    %111 = arith.subf %110, %102 : vector<8x128xf32>
    %112 = arith.mulf %111, %109 : vector<8x128xf32>
    %113 = arith.mulf %102, %76 : vector<8x128xf32>
    %114 = arith.addf %112, %113 : vector<8x128xf32>
    %115 = arith.index_cast %c2_i32 : i32 to index
    %c0_32 = arith.constant 0 : index
    %c0_33 = arith.constant 0 : index
    %116 = vector.load %arg4[%115, %c0_32, %c0_33] : memref<8x8x128xf32, #tpu.memory_space<vmem>>, vector<1x8x128xf32>
    %117 = vector.shape_cast %116 : vector<1x8x128xf32> to vector<8x128xf32>
    %118 = vector.shape_cast %114 : vector<8x128xf32> to vector<1x8x128xf32>
    tpu.vector_store %arg4[%115, %c0_32, %c0_33], %118 {strides = array<i32>} : memref<8x8x128xf32, #tpu.memory_space<vmem>>, vector<1x8x128xf32>,
    %c3_i32 = arith.constant 3 : i32
    %119 = arith.index_cast %c3_i32 : i32 to index
    %c0_34 = arith.constant 0 : index
    %c0_35 = arith.constant 0 : index
    %120 = vector.load %arg1[%119, %c0_34, %c0_35] : memref<8x8x384xf32, #tpu.memory_space<vmem>>, vector<1x8x384xf32>
    %121 = vector.shape_cast %120 : vector<1x8x384xf32> to vector<8x384xf32>
    %122 = arith.truncf %114 : vector<8x128xf32> to vector<8x128xbf16>
    %c0_36 = arith.constant 0 : index
    %c0_37 = arith.constant 0 : index
    %123 = vector.load %arg2[%c0_36, %c0_37] : memref<128x384xbf16, #tpu.memory_space<vmem>>, vector<128x384xbf16>
    %cst_38 = arith.constant dense<0.000000e+00> : vector<8x384xf32>
    %124 = tpu.matmul %122, %123, %cst_38 {dimension_numbers = #tpu.dot_dimension_numbers<[1], [0], [0], [1], [0, 0, 1, 1], [], []>} : vector<8x128xbf16>, vector<128x384xbf16>, vector<8x384xf32> -> vector<8x384xf32>
    %125 = vector.extract_strided_slice %121 {offsets = [0, 0], sizes = [8, 128], strides = [1, 1]} : vector<8x384xf32> to vector<8x128xf32>
    %126 = vector.extract_strided_slice %124 {offsets = [0, 0], sizes = [8, 128], strides = [1, 1]} : vector<8x384xf32> to vector<8x128xf32>
    %127 = arith.addf %125, %126 : vector<8x128xf32>
    %128 = arith.negf %127 : vector<8x128xf32>
    %129 = math.exp %128 : vector<8x128xf32>
    %cst_39 = arith.constant 1.000000e+00 : f32
    %130 = vector.broadcast %cst_39 : f32 to vector<8x128xf32>
    %131 = arith.addf %130, %129 : vector<8x128xf32>
    %132 = arith.divf %130, %131 : vector<8x128xf32>
    %133 = vector.extract_strided_slice %121 {offsets = [0, 128], sizes = [8, 128], strides = [1, 1]} : vector<8x384xf32> to vector<8x128xf32>
    %134 = vector.extract_strided_slice %124 {offsets = [0, 128], sizes = [8, 128], strides = [1, 1]} : vector<8x384xf32> to vector<8x128xf32>
    %135 = arith.addf %133, %134 : vector<8x128xf32>
    %136 = arith.negf %135 : vector<8x128xf32>
    %137 = math.exp %136 : vector<8x128xf32>
    %cst_40 = arith.constant 1.000000e+00 : f32
    %138 = vector.broadcast %cst_40 : f32 to vector<8x128xf32>
    %139 = arith.addf %138, %137 : vector<8x128xf32>
    %140 = arith.divf %138, %139 : vector<8x128xf32>
    %141 = vector.extract_strided_slice %121 {offsets = [0, 256], sizes = [8, 128], strides = [1, 1]} : vector<8x384xf32> to vector<8x128xf32>
    %142 = vector.extract_strided_slice %124 {offsets = [0, 256], sizes = [8, 128], strides = [1, 1]} : vector<8x384xf32> to vector<8x128xf32>
    %143 = vector.broadcast %3 : vector<1x128xf32> to vector<8x128xf32>
    %144 = arith.addf %142, %143 : vector<8x128xf32>
    %145 = arith.mulf %132, %144 : vector<8x128xf32>
    %146 = arith.addf %141, %145 : vector<8x128xf32>
    %147 = math.tanh %146 : vector<8x128xf32>
    %cst_41 = arith.constant 1.000000e+00 : f32
    %148 = vector.broadcast %cst_41 : f32 to vector<8x128xf32>
    %149 = arith.subf %148, %140 : vector<8x128xf32>
    %150 = arith.mulf %149, %147 : vector<8x128xf32>
    %151 = arith.mulf %140, %114 : vector<8x128xf32>
    %152 = arith.addf %150, %151 : vector<8x128xf32>
    %153 = arith.index_cast %c3_i32 : i32 to index
    %c0_42 = arith.constant 0 : index
    %c0_43 = arith.constant 0 : index
    %154 = vector.load %arg4[%153, %c0_42, %c0_43] : memref<8x8x128xf32, #tpu.memory_space<vmem>>, vector<1x8x128xf32>
    %155 = vector.shape_cast %154 : vector<1x8x128xf32> to vector<8x128xf32>
    %156 = vector.shape_cast %152 : vector<8x128xf32> to vector<1x8x128xf32>
    tpu.vector_store %arg4[%153, %c0_42, %c0_43], %156 {strides = array<i32>} : memref<8x8x128xf32, #tpu.memory_space<vmem>>, vector<1x8x128xf32>,
    %c4_i32 = arith.constant 4 : i32
    %157 = arith.index_cast %c4_i32 : i32 to index
    %c0_44 = arith.constant 0 : index
    %c0_45 = arith.constant 0 : index
    %158 = vector.load %arg1[%157, %c0_44, %c0_45] : memref<8x8x384xf32, #tpu.memory_space<vmem>>, vector<1x8x384xf32>
    %159 = vector.shape_cast %158 : vector<1x8x384xf32> to vector<8x384xf32>
    %160 = arith.truncf %152 : vector<8x128xf32> to vector<8x128xbf16>
    %c0_46 = arith.constant 0 : index
    %c0_47 = arith.constant 0 : index
    %161 = vector.load %arg2[%c0_46, %c0_47] : memref<128x384xbf16, #tpu.memory_space<vmem>>, vector<128x384xbf16>
    %cst_48 = arith.constant dense<0.000000e+00> : vector<8x384xf32>
    %162 = tpu.matmul %160, %161, %cst_48 {dimension_numbers = #tpu.dot_dimension_numbers<[1], [0], [0], [1], [0, 0, 1, 1], [], []>} : vector<8x128xbf16>, vector<128x384xbf16>, vector<8x384xf32> -> vector<8x384xf32>
    %163 = vector.extract_strided_slice %159 {offsets = [0, 0], sizes = [8, 128], strides = [1, 1]} : vector<8x384xf32> to vector<8x128xf32>
    %164 = vector.extract_strided_slice %162 {offsets = [0, 0], sizes = [8, 128], strides = [1, 1]} : vector<8x384xf32> to vector<8x128xf32>
    %165 = arith.addf %163, %164 : vector<8x128xf32>
    %166 = arith.negf %165 : vector<8x128xf32>
    %167 = math.exp %166 : vector<8x128xf32>
    %cst_49 = arith.constant 1.000000e+00 : f32
    %168 = vector.broadcast %cst_49 : f32 to vector<8x128xf32>
    %169 = arith.addf %168, %167 : vector<8x128xf32>
    %170 = arith.divf %168, %169 : vector<8x128xf32>
    %171 = vector.extract_strided_slice %159 {offsets = [0, 128], sizes = [8, 128], strides = [1, 1]} : vector<8x384xf32> to vector<8x128xf32>
    %172 = vector.extract_strided_slice %162 {offsets = [0, 128], sizes = [8, 128], strides = [1, 1]} : vector<8x384xf32> to vector<8x128xf32>
    %173 = arith.addf %171, %172 : vector<8x128xf32>
    %174 = arith.negf %173 : vector<8x128xf32>
    %175 = math.exp %174 : vector<8x128xf32>
    %cst_50 = arith.constant 1.000000e+00 : f32
    %176 = vector.broadcast %cst_50 : f32 to vector<8x128xf32>
    %177 = arith.addf %176, %175 : vector<8x128xf32>
    %178 = arith.divf %176, %177 : vector<8x128xf32>
    %179 = vector.extract_strided_slice %159 {offsets = [0, 256], sizes = [8, 128], strides = [1, 1]} : vector<8x384xf32> to vector<8x128xf32>
    %180 = vector.extract_strided_slice %162 {offsets = [0, 256], sizes = [8, 128], strides = [1, 1]} : vector<8x384xf32> to vector<8x128xf32>
    %181 = vector.broadcast %3 : vector<1x128xf32> to vector<8x128xf32>
    %182 = arith.addf %180, %181 : vector<8x128xf32>
    %183 = arith.mulf %170, %182 : vector<8x128xf32>
    %184 = arith.addf %179, %183 : vector<8x128xf32>
    %185 = math.tanh %184 : vector<8x128xf32>
    %cst_51 = arith.constant 1.000000e+00 : f32
    %186 = vector.broadcast %cst_51 : f32 to vector<8x128xf32>
    %187 = arith.subf %186, %178 : vector<8x128xf32>
    %188 = arith.mulf %187, %185 : vector<8x128xf32>
    %189 = arith.mulf %178, %152 : vector<8x128xf32>
    %190 = arith.addf %188, %189 : vector<8x128xf32>
    %191 = arith.index_cast %c4_i32 : i32 to index
    %c0_52 = arith.constant 0 : index
    %c0_53 = arith.constant 0 : index
    %192 = vector.load %arg4[%191, %c0_52, %c0_53] : memref<8x8x128xf32, #tpu.memory_space<vmem>>, vector<1x8x128xf32>
    %193 = vector.shape_cast %192 : vector<1x8x128xf32> to vector<8x128xf32>
    %194 = vector.shape_cast %190 : vector<8x128xf32> to vector<1x8x128xf32>
    tpu.vector_store %arg4[%191, %c0_52, %c0_53], %194 {strides = array<i32>} : memref<8x8x128xf32, #tpu.memory_space<vmem>>, vector<1x8x128xf32>,
    %c5_i32 = arith.constant 5 : i32
    %195 = arith.index_cast %c5_i32 : i32 to index
    %c0_54 = arith.constant 0 : index
    %c0_55 = arith.constant 0 : index
    %196 = vector.load %arg1[%195, %c0_54, %c0_55] : memref<8x8x384xf32, #tpu.memory_space<vmem>>, vector<1x8x384xf32>
    %197 = vector.shape_cast %196 : vector<1x8x384xf32> to vector<8x384xf32>
    %198 = arith.truncf %190 : vector<8x128xf32> to vector<8x128xbf16>
    %c0_56 = arith.constant 0 : index
    %c0_57 = arith.constant 0 : index
    %199 = vector.load %arg2[%c0_56, %c0_57] : memref<128x384xbf16, #tpu.memory_space<vmem>>, vector<128x384xbf16>
    %cst_58 = arith.constant dense<0.000000e+00> : vector<8x384xf32>
    %200 = tpu.matmul %198, %199, %cst_58 {dimension_numbers = #tpu.dot_dimension_numbers<[1], [0], [0], [1], [0, 0, 1, 1], [], []>} : vector<8x128xbf16>, vector<128x384xbf16>, vector<8x384xf32> -> vector<8x384xf32>
    %201 = vector.extract_strided_slice %197 {offsets = [0, 0], sizes = [8, 128], strides = [1, 1]} : vector<8x384xf32> to vector<8x128xf32>
    %202 = vector.extract_strided_slice %200 {offsets = [0, 0], sizes = [8, 128], strides = [1, 1]} : vector<8x384xf32> to vector<8x128xf32>
    %203 = arith.addf %201, %202 : vector<8x128xf32>
    %204 = arith.negf %203 : vector<8x128xf32>
    %205 = math.exp %204 : vector<8x128xf32>
    %cst_59 = arith.constant 1.000000e+00 : f32
    %206 = vector.broadcast %cst_59 : f32 to vector<8x128xf32>
    %207 = arith.addf %206, %205 : vector<8x128xf32>
    %208 = arith.divf %206, %207 : vector<8x128xf32>
    %209 = vector.extract_strided_slice %197 {offsets = [0, 128], sizes = [8, 128], strides = [1, 1]} : vector<8x384xf32> to vector<8x128xf32>
    %210 = vector.extract_strided_slice %200 {offsets = [0, 128], sizes = [8, 128], strides = [1, 1]} : vector<8x384xf32> to vector<8x128xf32>
    %211 = arith.addf %209, %210 : vector<8x128xf32>
    %212 = arith.negf %211 : vector<8x128xf32>
    %213 = math.exp %212 : vector<8x128xf32>
    %cst_60 = arith.constant 1.000000e+00 : f32
    %214 = vector.broadcast %cst_60 : f32 to vector<8x128xf32>
    %215 = arith.addf %214, %213 : vector<8x128xf32>
    %216 = arith.divf %214, %215 : vector<8x128xf32>
    %217 = vector.extract_strided_slice %197 {offsets = [0, 256], sizes = [8, 128], strides = [1, 1]} : vector<8x384xf32> to vector<8x128xf32>
    %218 = vector.extract_strided_slice %200 {offsets = [0, 256], sizes = [8, 128], strides = [1, 1]} : vector<8x384xf32> to vector<8x128xf32>
    %219 = vector.broadcast %3 : vector<1x128xf32> to vector<8x128xf32>
    %220 = arith.addf %218, %219 : vector<8x128xf32>
    %221 = arith.mulf %208, %220 : vector<8x128xf32>
    %222 = arith.addf %217, %221 : vector<8x128xf32>
    %223 = math.tanh %222 : vector<8x128xf32>
    %cst_61 = arith.constant 1.000000e+00 : f32
    %224 = vector.broadcast %cst_61 : f32 to vector<8x128xf32>
    %225 = arith.subf %224, %216 : vector<8x128xf32>
    %226 = arith.mulf %225, %223 : vector<8x128xf32>
    %227 = arith.mulf %216, %190 : vector<8x128xf32>
    %228 = arith.addf %226, %227 : vector<8x128xf32>
    %229 = arith.index_cast %c5_i32 : i32 to index
    %c0_62 = arith.constant 0 : index
    %c0_63 = arith.constant 0 : index
    %230 = vector.load %arg4[%229, %c0_62, %c0_63] : memref<8x8x128xf32, #tpu.memory_space<vmem>>, vector<1x8x128xf32>
    %231 = vector.shape_cast %230 : vector<1x8x128xf32> to vector<8x128xf32>
    %232 = vector.shape_cast %228 : vector<8x128xf32> to vector<1x8x128xf32>
    tpu.vector_store %arg4[%229, %c0_62, %c0_63], %232 {strides = array<i32>} : memref<8x8x128xf32, #tpu.memory_space<vmem>>, vector<1x8x128xf32>,
    %c6_i32 = arith.constant 6 : i32
    %233 = arith.index_cast %c6_i32 : i32 to index
    %c0_64 = arith.constant 0 : index
    %c0_65 = arith.constant 0 : index
    %234 = vector.load %arg1[%233, %c0_64, %c0_65] : memref<8x8x384xf32, #tpu.memory_space<vmem>>, vector<1x8x384xf32>
    %235 = vector.shape_cast %234 : vector<1x8x384xf32> to vector<8x384xf32>
    %236 = arith.truncf %228 : vector<8x128xf32> to vector<8x128xbf16>
    %c0_66 = arith.constant 0 : index
    %c0_67 = arith.constant 0 : index
    %237 = vector.load %arg2[%c0_66, %c0_67] : memref<128x384xbf16, #tpu.memory_space<vmem>>, vector<128x384xbf16>
    %cst_68 = arith.constant dense<0.000000e+00> : vector<8x384xf32>
    %238 = tpu.matmul %236, %237, %cst_68 {dimension_numbers = #tpu.dot_dimension_numbers<[1], [0], [0], [1], [0, 0, 1, 1], [], []>} : vector<8x128xbf16>, vector<128x384xbf16>, vector<8x384xf32> -> vector<8x384xf32>
    %239 = vector.extract_strided_slice %235 {offsets = [0, 0], sizes = [8, 128], strides = [1, 1]} : vector<8x384xf32> to vector<8x128xf32>
    %240 = vector.extract_strided_slice %238 {offsets = [0, 0], sizes = [8, 128], strides = [1, 1]} : vector<8x384xf32> to vector<8x128xf32>
    %241 = arith.addf %239, %240 : vector<8x128xf32>
    %242 = arith.negf %241 : vector<8x128xf32>
    %243 = math.exp %242 : vector<8x128xf32>
    %cst_69 = arith.constant 1.000000e+00 : f32
    %244 = vector.broadcast %cst_69 : f32 to vector<8x128xf32>
    %245 = arith.addf %244, %243 : vector<8x128xf32>
    %246 = arith.divf %244, %245 : vector<8x128xf32>
    %247 = vector.extract_strided_slice %235 {offsets = [0, 128], sizes = [8, 128], strides = [1, 1]} : vector<8x384xf32> to vector<8x128xf32>
    %248 = vector.extract_strided_slice %238 {offsets = [0, 128], sizes = [8, 128], strides = [1, 1]} : vector<8x384xf32> to vector<8x128xf32>
    %249 = arith.addf %247, %248 : vector<8x128xf32>
    %250 = arith.negf %249 : vector<8x128xf32>
    %251 = math.exp %250 : vector<8x128xf32>
    %cst_70 = arith.constant 1.000000e+00 : f32
    %252 = vector.broadcast %cst_70 : f32 to vector<8x128xf32>
    %253 = arith.addf %252, %251 : vector<8x128xf32>
    %254 = arith.divf %252, %253 : vector<8x128xf32>
    %255 = vector.extract_strided_slice %235 {offsets = [0, 256], sizes = [8, 128], strides = [1, 1]} : vector<8x384xf32> to vector<8x128xf32>
    %256 = vector.extract_strided_slice %238 {offsets = [0, 256], sizes = [8, 128], strides = [1, 1]} : vector<8x384xf32> to vector<8x128xf32>
    %257 = vector.broadcast %3 : vector<1x128xf32> to vector<8x128xf32>
    %258 = arith.addf %256, %257 : vector<8x128xf32>
    %259 = arith.mulf %246, %258 : vector<8x128xf32>
    %260 = arith.addf %255, %259 : vector<8x128xf32>
    %261 = math.tanh %260 : vector<8x128xf32>
    %cst_71 = arith.constant 1.000000e+00 : f32
    %262 = vector.broadcast %cst_71 : f32 to vector<8x128xf32>
    %263 = arith.subf %262, %254 : vector<8x128xf32>
    %264 = arith.mulf %263, %261 : vector<8x128xf32>
    %265 = arith.mulf %254, %228 : vector<8x128xf32>
    %266 = arith.addf %264, %265 : vector<8x128xf32>
    %267 = arith.index_cast %c6_i32 : i32 to index
    %c0_72 = arith.constant 0 : index
    %c0_73 = arith.constant 0 : index
    %268 = vector.load %arg4[%267, %c0_72, %c0_73] : memref<8x8x128xf32, #tpu.memory_space<vmem>>, vector<1x8x128xf32>
    %269 = vector.shape_cast %268 : vector<1x8x128xf32> to vector<8x128xf32>
    %270 = vector.shape_cast %266 : vector<8x128xf32> to vector<1x8x128xf32>
    tpu.vector_store %arg4[%267, %c0_72, %c0_73], %270 {strides = array<i32>} : memref<8x8x128xf32, #tpu.memory_space<vmem>>, vector<1x8x128xf32>,
    %c7_i32 = arith.constant 7 : i32
    %271 = arith.index_cast %c7_i32 : i32 to index
    %c0_74 = arith.constant 0 : index
    %c0_75 = arith.constant 0 : index
    %272 = vector.load %arg1[%271, %c0_74, %c0_75] : memref<8x8x384xf32, #tpu.memory_space<vmem>>, vector<1x8x384xf32>
    %273 = vector.shape_cast %272 : vector<1x8x384xf32> to vector<8x384xf32>
    %274 = arith.truncf %266 : vector<8x128xf32> to vector<8x128xbf16>
    %c0_76 = arith.constant 0 : index
    %c0_77 = arith.constant 0 : index
    %275 = vector.load %arg2[%c0_76, %c0_77] : memref<128x384xbf16, #tpu.memory_space<vmem>>, vector<128x384xbf16>
    %cst_78 = arith.constant dense<0.000000e+00> : vector<8x384xf32>
    %276 = tpu.matmul %274, %275, %cst_78 {dimension_numbers = #tpu.dot_dimension_numbers<[1], [0], [0], [1], [0, 0, 1, 1], [], []>} : vector<8x128xbf16>, vector<128x384xbf16>, vector<8x384xf32> -> vector<8x384xf32>
    %277 = vector.extract_strided_slice %273 {offsets = [0, 0], sizes = [8, 128], strides = [1, 1]} : vector<8x384xf32> to vector<8x128xf32>
    %278 = vector.extract_strided_slice %276 {offsets = [0, 0], sizes = [8, 128], strides = [1, 1]} : vector<8x384xf32> to vector<8x128xf32>
    %279 = arith.addf %277, %278 : vector<8x128xf32>
    %280 = arith.negf %279 : vector<8x128xf32>
    %281 = math.exp %280 : vector<8x128xf32>
    %cst_79 = arith.constant 1.000000e+00 : f32
    %282 = vector.broadcast %cst_79 : f32 to vector<8x128xf32>
    %283 = arith.addf %282, %281 : vector<8x128xf32>
    %284 = arith.divf %282, %283 : vector<8x128xf32>
    %285 = vector.extract_strided_slice %273 {offsets = [0, 128], sizes = [8, 128], strides = [1, 1]} : vector<8x384xf32> to vector<8x128xf32>
    %286 = vector.extract_strided_slice %276 {offsets = [0, 128], sizes = [8, 128], strides = [1, 1]} : vector<8x384xf32> to vector<8x128xf32>
    %287 = arith.addf %285, %286 : vector<8x128xf32>
    %288 = arith.negf %287 : vector<8x128xf32>
    %289 = math.exp %288 : vector<8x128xf32>
    %cst_80 = arith.constant 1.000000e+00 : f32
    %290 = vector.broadcast %cst_80 : f32 to vector<8x128xf32>
    %291 = arith.addf %290, %289 : vector<8x128xf32>
    %292 = arith.divf %290, %291 : vector<8x128xf32>
    %293 = vector.extract_strided_slice %273 {offsets = [0, 256], sizes = [8, 128], strides = [1, 1]} : vector<8x384xf32> to vector<8x128xf32>
    %294 = vector.extract_strided_slice %276 {offsets = [0, 256], sizes = [8, 128], strides = [1, 1]} : vector<8x384xf32> to vector<8x128xf32>
    %295 = vector.broadcast %3 : vector<1x128xf32> to vector<8x128xf32>
    %296 = arith.addf %294, %295 : vector<8x128xf32>
    %297 = arith.mulf %284, %296 : vector<8x128xf32>
    %298 = arith.addf %293, %297 : vector<8x128xf32>
    %299 = math.tanh %298 : vector<8x128xf32>
    %cst_81 = arith.constant 1.000000e+00 : f32
    %300 = vector.broadcast %cst_81 : f32 to vector<8x128xf32>
    %301 = arith.subf %300, %292 : vector<8x128xf32>
    %302 = arith.mulf %301, %299 : vector<8x128xf32>
    %303 = arith.mulf %292, %266 : vector<8x128xf32>
    %304 = arith.addf %302, %303 : vector<8x128xf32>
    %305 = arith.index_cast %c7_i32 : i32 to index
    %c0_82 = arith.constant 0 : index
    %c0_83 = arith.constant 0 : index
    %306 = vector.load %arg4[%305, %c0_82, %c0_83] : memref<8x8x128xf32, #tpu.memory_space<vmem>>, vector<1x8x128xf32>
    %307 = vector.shape_cast %306 : vector<1x8x128xf32> to vector<8x128xf32>
    %308 = vector.shape_cast %304 : vector<8x128xf32> to vector<1x8x128xf32>
    tpu.vector_store %arg4[%305, %c0_82, %c0_83], %308 {strides = array<i32>} : memref<8x8x128xf32, #tpu.memory_space<vmem>>, vector<1x8x128xf32>,
    %c8_i32 = arith.constant 8 : i32
    %c0_84 = arith.constant 0 : index
    %c0_85 = arith.constant 0 : index
    %309 = vector.load %arg5[%c0_84, %c0_85] : memref<8x128xf32, #tpu.memory_space<vmem>>, vector<8x128xf32>
    tpu.vector_store %arg5[%c0_84, %c0_85], %304 {strides = array<i32>} : memref<8x128xf32, #tpu.memory_space<vmem>>, vector<8x128xf32>,
    return
  }
  func.func @transform_0(%arg0: i32) -> (i32, i32, i32) {
    %c0_i32 = arith.constant 0 : i32
    %c0_i32_0 = arith.constant 0 : i32
    %c0_i32_1 = arith.constant 0 : i32
    return %arg0, %c0_i32, %c0_i32_0 : i32, i32, i32
  }
  func.func @transform_1(%arg0: i32) -> (i32, i32) {
    %c0_i32 = arith.constant 0 : i32
    %c0_i32_0 = arith.constant 0 : i32
    %c0_i32_1 = arith.constant 0 : i32
    return %c0_i32, %c0_i32_0 : i32, i32
  }
  func.func @transform_2(%arg0: i32) -> (i32, i32) {
    %c0_i32 = arith.constant 0 : i32
    %c0_i32_0 = arith.constant 0 : i32
    %c0_i32_1 = arith.constant 0 : i32
    return %c0_i32, %c0_i32_0 : i32, i32
  }
  func.func @transform_3(%arg0: i32) -> (i32, i32, i32) {
    %c0_i32 = arith.constant 0 : i32
    %c0_i32_0 = arith.constant 0 : i32
    %c0_i32_1 = arith.constant 0 : i32
    return %arg0, %c0_i32, %c0_i32_0 : i32, i32, i32
  }
}

</mosaic_0001>

<bundles_post_ra>
// kernel: tpu_custom_call.1
= control target key start
LH: loop header
LB: loop body
LE: loop exit
PB: predicated region body
PF: predicated region fallthrough
CT: control target
= control target key end

     0   :  { %8 = vsyncpa [#allocation4], 0  ;;  %s3365_s0 = inlined_call_operand.hbm [shape: f32[8,8,384], index: 0, kind: input, shape index: {}]   ;;  %s3366_s1 = inlined_call_operand.hbm [shape: bf16[128,384], index: 1, kind: input, shape index: {}]   ;;  %s3367_s2 = inlined_call_operand.vmem [shape: f32[1,128], index: 2, kind: input, shape index: {}]   ;;  %s3368_s3 = inlined_call_operand.hbm [shape: f32[8,8,128], index: 3, kind: output, shape index: {}]  }
   0x1   :  { %9 = vsyncpa [#allocation7], 0 }
   0x2   :  { %10 = vsyncpa [#allocation5], 0  ;;  %s15_s14 = sshll.u32 %s3365_s0, 4  ;;  %s3254_s15 = smov [#allocation3]   ;;  %s16_s14 = int_to_ptr.hbm [resolvable:$true] %s15_s14 }
   0x3   :  { %s17_s16 = sshll.u32 %s3254_s15, 4  ;;  %s28_s19 = sshll.u32 %s3366_s1, 4  ;;  %s18_s16 = int_to_ptr.vmem [resolvable:$true] %s17_s16  ;;  %s29_s19 = int_to_ptr.hbm [resolvable:$true] %s28_s19 }
   0x4   :  { %s3255_s20 = smov 384   ;;  %s3256_s21 = smov 24  }
   0x5   :  { %23 = dma.hbm_to_vmem [thread:$0]  %s16_s14, 3072, %s18_s16, [#allocation4], %s3255_s20, %s3255_s20, %s3256_s21  }
   0x6   :  { %s3257_s22 = smov [#allocation6]   ;;  %s3258_s24 = smov 192  }
   0x7   :  { %s30_s23 = sshll.u32 %s3257_s22, 4  ;;  %s3259_s25 = smov 12   ;;  %s31_s23 = int_to_ptr.vmem [resolvable:$true] %s30_s23 }
   0x8   :  { %36 = dma.hbm_to_vmem [thread:$0]  %s29_s19, 3072, %s31_s23, [#allocation7], %s3258_s24, %s3258_s24, %s3259_s25  }
   0x9   :  { %3248 = dma.done.wait [#allocation4], 3072  }
   0xa   :  { %3249 = vsyncadd [#allocation4], 4294964224 }
   0xb   :  { %3250 = dma.done.wait [#allocation7], 3072  }
   0xc   :  { %3251 = vsyncadd [#allocation7], 4294964224  ;;  %v2194_v0 = vld [vmem:[#allocation6 + $0xa8] sm:$0xf]  ;;  %v2914_v1 = vld [vmem:[#allocation6 + $0xb0] sm:$0xf0] }
   0xd   :  { %v2913_v2 = vld [vmem:[#allocation6 + $0xac] sm:$0xf]  ;;  %v2195_v3 = vor.u32 %v2914_v1, %v2194_v0  ;;  %v2196_v4 = vld [vmem:[#allocation6 + $0xb4] sm:$0xf0]  ;;  %v2182_v5 = vld [vmem:[#allocation6 + $0x90] sm:$0xf] }
   0xe   :  { %v2911_v6 = vld [vmem:[#allocation6 + $0x98] sm:$0xf0]  ;;  %v2199_v7 = vor.u32 %v2913_v2, %v2196_v4  ;;  %v2910_v8 = vld [vmem:[#allocation6 + $0x94] sm:$0xf]  ;;  %v2184_v9 = vld [vmem:[#allocation6 + $0x9c] sm:$0xf0] }
   0xf   :  { %218 = vmatpush.bf16.msra.mxu0 %v2195_v3  ;;  %v2183_v10 = vor.u32 %v2911_v6, %v2182_v5  ;;  %v2187_v11 = vor.u32 %v2910_v8, %v2184_v9  ;;  %v2170_v12 = vld [vmem:[#allocation6 + $0x78] sm:$0xf]  ;;  %v2908_v13 = vld [vmem:[#allocation6 + $0x80] sm:$0xf0]  ;;  %v2907_v14 = vld [vmem:[#allocation6 + $0x7c] sm:$0xf] }
  0x10   :  { %231 = vmatpush.bf16.msra.mxu1 %v2199_v7  ;;  %v2172_v15 = vld [vmem:[#allocation6 + $0x84] sm:$0xf0]  ;;  %v2202_v16 = vld [vmem:[#allocation6 + $0xb0] sm:$0xf]  ;;  %v2915_v17 = vld [vmem:[#allocation6 + $0xb8] sm:$0xf0]  ;;  %v2171_v19 = vor.u32 %v2908_v13, %v2170_v12 }
  0x11   :  { %v2203_v18 = vor.u32 %v2915_v17, %v2202_v16  ;;  %v2190_v20 = vld [vmem:[#allocation6 + $0x98] sm:$0xf]  ;;  %v2912_v21 = vld [vmem:[#allocation6 + $0xa0] sm:$0xf0]  ;;  %v2175_v22 = vor.u32 %v2907_v14, %v2172_v15  ;;  %v2158_v23 = vld [vmem:[#allocation6 + $0x60] sm:$0xf] }
  0x12   :  { %v2905_v24 = vld [vmem:[#allocation6 + $0x68] sm:$0xf0]  ;;  %v2904_v25 = vld [vmem:[#allocation6 + $0x64] sm:$0xf]  ;;  %v2191_v26 = vor.u32 %v2912_v21, %v2190_v20  ;;  %v2160_v27 = vld [vmem:[#allocation6 + $0x6c] sm:$0xf0] }
  0x13   :  { %219 = vmatpush.bf16.msra.mxu0 %v2183_v10  ;;  %244 = vmatpush.bf16.msra.mxu2 %v2203_v18  ;;  %v2178_v28 = vld [vmem:[#allocation6 + $0x80] sm:$0xf]  ;;  %v2909_v29 = vld [vmem:[#allocation6 + $0x88] sm:$0xf0]  ;;  %v2159_v30 = vor.u32 %v2905_v24, %v2158_v23  ;;  %v2163_v31 = vor.u32 %v2904_v25, %v2160_v27  ;;  %v2146_v32 = vld [vmem:[#allocation6 + $0x48] sm:$0xf] }
  0x14   :  { %232 = vmatpush.bf16.msra.mxu1 %v2187_v11  ;;  %v2902_v33 = vld [vmem:[#allocation6 + $0x50] sm:$0xf0]  ;;  %v2901_v34 = vld [vmem:[#allocation6 + $0x4c] sm:$0xf]  ;;  %v2179_v35 = vor.u32 %v2909_v29, %v2178_v28  ;;  %v2148_v36 = vld [vmem:[#allocation6 + $0x54] sm:$0xf0] }
  0x15   :  { %v2166_v37 = vld [vmem:[#allocation6 + $0x68] sm:$0xf]  ;;  %v2906_v38 = vld [vmem:[#allocation6 + $0x70] sm:$0xf0]  ;;  %v2147_v39 = vor.u32 %v2902_v33, %v2146_v32  ;;  %v2134_v40 = vld [vmem:[#allocation6 + $0x30] sm:$0xf]  ;;  %v2151_v41 = vor.u32 %v2901_v34, %v2148_v36 }
  0x16   :  { %v2899_v42 = vld [vmem:[#allocation6 + $0x38] sm:$0xf0]  ;;  %v2898_v43 = vld [vmem:[#allocation6 + $0x34] sm:$0xf]  ;;  %v2167_v44 = vor.u32 %v2906_v38, %v2166_v37  ;;  %v2136_v45 = vld [vmem:[#allocation6 + $0x3c] sm:$0xf0] }
  0x17   :  { %220 = vmatpush.bf16.msra.mxu0 %v2171_v19  ;;  %245 = vmatpush.bf16.msra.mxu2 %v2191_v26  ;;  %v2154_v46 = vld [vmem:[#allocation6 + $0x50] sm:$0xf]  ;;  %v2903_v47 = vld [vmem:[#allocation6 + $0x58] sm:$0xf0]  ;;  %v2135_v48 = vor.u32 %v2899_v42, %v2134_v40  ;;  %v2139_v49 = vor.u32 %v2898_v43, %v2136_v45  ;;  %v2122_v50 = vld [vmem:[#allocation6 + $0x18] sm:$0xf] }
  0x18   :  { %233 = vmatpush.bf16.msra.mxu1 %v2175_v22  ;;  %v2896_v51 = vld [vmem:[#allocation6 + $0x20] sm:$0xf0]  ;;  %v2895_v52 = vld [vmem:[#allocation6 + $0x1c] sm:$0xf]  ;;  %v2155_v53 = vor.u32 %v2903_v47, %v2154_v46  ;;  %v2124_v54 = vld [vmem:[#allocation6 + $0x24] sm:$0xf0] }
  0x19   :  { %v2142_v55 = vld [vmem:[#allocation6 + $0x38] sm:$0xf]  ;;  %v2900_v56 = vld [vmem:[#allocation6 + $0x40] sm:$0xf0]  ;;  %v2123_v57 = vor.u32 %v2896_v51, %v2122_v50  ;;  %v2127_v58 = vor.u32 %v2895_v52, %v2124_v54  ;;  %v2110_v59 = vld [vmem:[#allocation6] sm:$0xf] }
  0x1a   :  { %v2893_v60 = vld [vmem:[#allocation6 + $0x8] sm:$0xf0]  ;;  %v2892_v61 = vld [vmem:[#allocation6 + $0x4] sm:$0xf]  ;;  %v2143_v62 = vor.u32 %v2900_v56, %v2142_v55  ;;  %v2112_v63 = vld [vmem:[#allocation6 + $0xc] sm:$0xf0] }
  0x1b   :  { %221 = vmatpush.bf16.msra.mxu0 %v2159_v30  ;;  %246 = vmatpush.bf16.msra.mxu2 %v2179_v35  ;;  %v2130_v0 = vld [vmem:[#allocation6 + $0x20] sm:$0xf]  ;;  %v2897_v1 = vld [vmem:[#allocation6 + $0x28] sm:$0xf0]  ;;  %v2111_v2 = vor.u32 %v2893_v60, %v2110_v59  ;;  %v2115_v3 = vor.u32 %v2892_v61, %v2112_v63  ;;  %v2118_v5 = vld [vmem:[#allocation6 + $0x8] sm:$0xf] }
  0x1c   :  { %234 = vmatpush.bf16.msra.mxu1 %v2163_v31  ;;  %v2131_v4 = vor.u32 %v2897_v1, %v2130_v0  ;;  %v2894_v6 = vld [vmem:[#allocation6 + $0x10] sm:$0xf0]  ;;  %v3260_v8 = vmov 0.0|0.0   ;;  %v2292_v9 = vld [vmem:[#allocation6 + $0xa8] sm:$0xf]  ;;  %s2094_s4 = sshll.u32 %s3368_s3, 4  ;;  %s2095_s4 = int_to_ptr.hbm [resolvable:$true] %s2094_s4 }
  0x1d   :  { %v2119_v7 = vor.u32 %v2894_v6, %v2118_v5  ;;  %v2938_v10 = vld [vmem:[#allocation6 + $0xb0] sm:$0xf0]  ;;  %v2937_v11 = vld [vmem:[#allocation6 + $0xac] sm:$0xf]  ;;  %v2294_v13 = vld [vmem:[#allocation6 + $0xb4] sm:$0xf0] }
  0x1e   :  { %v2293_v12 = vor.u32 %v2938_v10, %v2292_v9  ;;  %v2300_v14 = vld [vmem:[#allocation6 + $0xb0] sm:$0xf]  ;;  %v2939_v15 = vld [vmem:[#allocation6 + $0xb8] sm:$0xf0]  ;;  %v2297_v16 = vor.u32 %v2937_v11, %v2294_v13  ;;  %v2934_v20 = vld [vmem:[#allocation6 + $0x94] sm:$0xf] }
  0x1f   :  { %222 = vmatpush.bf16.msra.mxu0 %v2147_v39  ;;  %247 = vmatpush.bf16.msra.mxu2 %v2167_v44  ;;  %v2301_v17 = vor.u32 %v2939_v15, %v2300_v14  ;;  %v2280_v18 = vld [vmem:[#allocation6 + $0x90] sm:$0xf]  ;;  %v2935_v19 = vld [vmem:[#allocation6 + $0x98] sm:$0xf0]  ;;  %v2282_v22 = vld [vmem:[#allocation6 + $0x9c] sm:$0xf0] }
  0x20   :  { %235 = vmatpush.bf16.msra.mxu1 %v2151_v41  ;;  %474 = vmatpush.bf16.msra.mxu3 %v2293_v12  ;;  %v2281_v21 = vor.u32 %v2935_v19, %v2280_v18  ;;  %v2288_v23 = vld [vmem:[#allocation6 + $0x98] sm:$0xf]  ;;  %v2936_v24 = vld [vmem:[#allocation6 + $0xa0] sm:$0xf0]  ;;  %v2285_v25 = vor.u32 %v2934_v20, %v2282_v22  ;;  %v2931_v29 = vld [vmem:[#allocation6 + $0x7c] sm:$0xf] }
  0x21   :  { %v2289_v26 = vor.u32 %v2936_v24, %v2288_v23  ;;  %v2268_v27 = vld [vmem:[#allocation6 + $0x78] sm:$0xf]  ;;  %v2932_v28 = vld [vmem:[#allocation6 + $0x80] sm:$0xf0]  ;;  %v2270_v31 = vld [vmem:[#allocation6 + $0x84] sm:$0xf0] }
  0x22   :  { %v2269_v30 = vor.u32 %v2932_v28, %v2268_v27  ;;  %v2276_v32 = vld [vmem:[#allocation6 + $0x80] sm:$0xf]  ;;  %v2933_v33 = vld [vmem:[#allocation6 + $0x88] sm:$0xf0]  ;;  %v2273_v34 = vor.u32 %v2931_v29, %v2270_v31  ;;  %v2928_v38 = vld [vmem:[#allocation6 + $0x64] sm:$0xf] }
  0x23   :  { %223 = vmatpush.bf16.msra.mxu0 %v2135_v48  ;;  %248 = vmatpush.bf16.msra.mxu2 %v2155_v53  ;;  %v2277_v35 = vor.u32 %v2933_v33, %v2276_v32  ;;  %v2256_v36 = vld [vmem:[#allocation6 + $0x60] sm:$0xf]  ;;  %v2929_v37 = vld [vmem:[#allocation6 + $0x68] sm:$0xf0]  ;;  %v2258_v40 = vld [vmem:[#allocation6 + $0x6c] sm:$0xf0] }
  0x24   :  { %236 = vmatpush.bf16.msra.mxu1 %v2139_v49  ;;  %475 = vmatpush.bf16.msra.mxu3 %v2281_v21  ;;  %v2257_v39 = vor.u32 %v2929_v37, %v2256_v36  ;;  %v2264_v41 = vld [vmem:[#allocation6 + $0x68] sm:$0xf]  ;;  %v2261_v42 = vor.u32 %v2928_v38, %v2258_v40  ;;  %v2930_v43 = vld [vmem:[#allocation6 + $0x70] sm:$0xf0]  ;;  %v54_v44 = vld [vmem:[#allocation3] sm:$0xff]  ;;  %s3262_s5 = smov 128  }
  0x25   :  { %v55_v45 = vld [vmem:[#allocation3 + $0x8] sm:$0xff]  ;;  %v2265_v46 = vor.u32 %v2930_v43, %v2264_v41  ;;  %v2926_v48 = vld [vmem:[#allocation6 + $0x50] sm:$0xf0]  ;;  %v2246_v52 = vld [vmem:[#allocation6 + $0x54] sm:$0xf0]  ;;  %s3263_s6 = smov 8  }
  0x26   :  { %v2244_v47 = vld [vmem:[#allocation6 + $0x48] sm:$0xf]  ;;  %v2925_v49 = vld [vmem:[#allocation6 + $0x4c] sm:$0xf]  ;;  %v2252_v53 = vld [vmem:[#allocation6 + $0x50] sm:$0xf] }
  0x27   :  { %224 = vmatpush.bf16.msra.mxu0 %v2123_v57  ;;  %249 = vmatpush.bf16.msra.mxu2 %v2143_v62  ;;  %v2245_v51 = vor.u32 %v2926_v48, %v2244_v47  ;;  %v2927_v54 = vld [vmem:[#allocation6 + $0x58] sm:$0xf0]  ;;  %v2249_v57 = vor.u32 %v2925_v49, %v2246_v52  ;;  %v2232_v61 = vld [vmem:[#allocation6 + $0x30] sm:$0xf]  ;;  %v2922_v1 = vld [vmem:[#allocation6 + $0x34] sm:$0xf] }
  0x28   :  { %237 = vmatpush.bf16.msra.mxu1 %v2127_v58  ;;  %476 = vmatpush.bf16.msra.mxu3 %v2269_v30  ;;  %v2253_v58 = vor.u32 %v2927_v54, %v2252_v53  ;;  %v2923_v62 = vld [vmem:[#allocation6 + $0x38] sm:$0xf0]  ;;  %v2924_v5 = vld [vmem:[#allocation6 + $0x40] sm:$0xf0]  ;;  %v2220_v6 = vld [vmem:[#allocation6 + $0x18] sm:$0xf] }
  0x29   :  { %v2233_v0 = vor.u32 %v2923_v62, %v2232_v61  ;;  %v2919_v9 = vld [vmem:[#allocation6 + $0x1c] sm:$0xf]  ;;  %v2222_v10 = vld [vmem:[#allocation6 + $0x24] sm:$0xf0]  ;;  %v2228_v13 = vld [vmem:[#allocation6 + $0x20] sm:$0xf] }
  0x2a   :  { %v2225_v12 = vor.u32 %v2919_v9, %v2222_v10  ;;  %v2921_v14 = vld [vmem:[#allocation6 + $0x28] sm:$0xf0]  ;;  %v2208_v15 = vld [vmem:[#allocation6] sm:$0xf]  ;;  %v2916_v19 = vld [vmem:[#allocation6 + $0x4] sm:$0xf] }
  0x2b   :  { %225 = vmatpush.bf16.msra.mxu0 %v2111_v2  ;;  %250 = vmatpush.bf16.msra.mxu2 %v2131_v4  ;;  %v2234_v2 = vld [vmem:[#allocation6 + $0x3c] sm:$0xf0]  ;;  %v2240_v4 = vld [vmem:[#allocation6 + $0x38] sm:$0xf]  ;;  %v2917_v18 = vld [vmem:[#allocation6 + $0x8] sm:$0xf0] }
  0x2c   :  { %238 = vmatpush.bf16.msra.mxu1 %v2115_v3  ;;  %477 = vmatpush.bf16.msra.mxu3 %v2257_v39  ;;  %v2237_v3 = vor.u32 %v2922_v1, %v2234_v2  ;;  %v2210_v20 = vld [vmem:[#allocation6 + $0xc] sm:$0xf0]  ;;  %v2216_v22 = vld [vmem:[#allocation6 + $0x8] sm:$0xf]  ;;  %v2918_v23 = vld [vmem:[#allocation6 + $0x10] sm:$0xf0]  ;;  %v2209_v24 = vor.u32 %v2917_v18, %v2208_v15 }
  0x2d   :  { %v2213_v27 = vor.u32 %v2916_v19, %v2210_v20  ;;  %v2217_v30 = vor.u32 %v2918_v23, %v2216_v22  ;;  %v3293_v38 = vld [vmem:[%s3367_s2] ss:$0 sm:$0xff]  ;;  %v56_v48 = vld [vmem:[#allocation3 + $0x10] sm:$0xff]  ;;  %v2961_v2 = vld [vmem:[#allocation6 + $0xac] sm:$0xf] }
  0x2e   :  { %226 = vmatmul.bf16.vlgmr.msra.gmra.mxu0 %v3260_v8  ;;  %v2962_v1 = vld [vmem:[#allocation6 + $0xb0] sm:$0xf0]  ;;  %v2378_v9 = vld [vmem:[#allocation6 + $0x90] sm:$0xf]  ;;  %v2959_v10 = vld [vmem:[#allocation6 + $0x98] sm:$0xf0] }
  0x2f   :  { %239 = vmatmul.bf16.vlgmr.msra.gmra.mxu1 %v3260_v8  ;;  %251 = vmatpush.bf16.msra.mxu2 %v2119_v7  ;;  %v2241_v7 = vor.u32 %v2924_v5, %v2240_v4  ;;  %v2392_v4 = vld [vmem:[#allocation6 + $0xb4] sm:$0xf0]  ;;  %v2398_v5 = vld [vmem:[#allocation6 + $0xb0] sm:$0xf]  ;;  %v2960_v15 = vld [vmem:[#allocation6 + $0xa0] sm:$0xf0] }
  0x30   :  { %487 = vmatpush.bf16.msrb.mxu0 %v2297_v16  ;;  %500 = vmatpush.bf16.msrb.mxu1 %v2301_v17  ;;  %v2229_v17 = vor.u32 %v2921_v14, %v2228_v13  ;;  %v2380_v13 = vld [vmem:[#allocation6 + $0x9c] sm:$0xf0]  ;;  %v2386_v14 = vld [vmem:[#allocation6 + $0x98] sm:$0xf]  ;;  %v2956_v20 = vld [vmem:[#allocation6 + $0x80] sm:$0xf0] }
  0x31   :  { %478 = vmatpush.bf16.msra.mxu3 %v2245_v51  ;;  %v311_v18 = vld [vmem:[#allocation3 + $0x20] sm:$0xff]  ;;  %v2366_v19 = vld [vmem:[#allocation6 + $0x78] sm:$0xf]  ;;  %v2368_v23 = vld [vmem:[#allocation6 + $0x84] sm:$0xf0] }
  0x32   :  { %252 = vmatmul.bf16.vlgmr.msra.gmra.mxu2 %v3260_v8  ;;  %v2920_v8 = vld [vmem:[#allocation6 + $0x20] sm:$0xf0]  ;;  %v2367_v22 = vor.u32 %v2956_v20, %v2366_v19  ;;  %v2314_v19 = vld [vmem:[#allocation6 + $0x8] sm:$0xf]  ;;  %v2942_v20 = vld [vmem:[#allocation6 + $0x10] sm:$0xf0] }
  0x33   :  { %v2221_v11 = vor.u32 %v2920_v8, %v2220_v6  ;;  %v2963_v6 = vld [vmem:[#allocation6 + $0xb8] sm:$0xf0] }
  0x34   :  { %488 = vmatpush.bf16.msrb.mxu0 %v2285_v25  ;;  %501 = vmatpush.bf16.msrb.mxu1 %v2289_v26  ;;  %v2399_v8 = vor.u32 %v2963_v6, %v2398_v5  ;;  %v2943_v5 = vld [vmem:[#allocation6 + $0x1c] sm:$0xf]  ;;  %v2320_v6 = vld [vmem:[#allocation6 + $0x24] sm:$0xf0] }
  0x35   :  { %479 = vmatpush.bf16.msra.mxu3 %v2233_v0  ;;  %v2390_v0 = vld [vmem:[#allocation6 + $0xa8] sm:$0xf] }
  0x38   :  { %489 = vmatpush.bf16.msrb.mxu0 %v2273_v34  ;;  %502 = vmatpush.bf16.msrb.mxu1 %v2277_v35 }
  0x39   :  { %480 = vmatpush.bf16.msra.mxu3 %v2221_v11  ;;  %v2958_v11 = vld [vmem:[#allocation6 + $0x94] sm:$0xf] }
  0x3c   :  { %490 = vmatpush.bf16.msrb.mxu0 %v2261_v42  ;;  %503 = vmatpush.bf16.msrb.mxu1 %v2265_v46 }
  0x3d   :  { %481 = vmatpush.bf16.msra.mxu3 %v2209_v24  ;;  %v2374_v24 = vld [vmem:[#allocation6 + $0x80] sm:$0xf] }
  0x40   :  { %491 = vmatpush.bf16.msrb.mxu0 %v2249_v57  ;;  %504 = vmatpush.bf16.msrb.mxu1 %v2253_v58 }
  0x44   :  { %492 = vmatpush.bf16.msrb.mxu0 %v2237_v3  ;;  %505 = vmatpush.bf16.msrb.mxu1 %v2241_v7  ;;  %v2391_v3 = vor.u32 %v2962_v1, %v2390_v0  ;;  %v2395_v7 = vor.u32 %v2961_v2, %v2392_v4  ;;  %v2944_v4 = vld [vmem:[#allocation6 + $0x20] sm:$0xf0] }
  0x46   :  { %728 = vmatpush.bf16.msrb.mxu2 %v2391_v3  ;;  %741 = vmatpush.bf16.msrb.mxu3 %v2395_v7  ;;  %v2318_v3 = vld [vmem:[#allocation6 + $0x18] sm:$0xf]  ;;  %v2326_v7 = vld [vmem:[#allocation6 + $0x20] sm:$0xf] }
  0x48   :  { %493 = vmatpush.bf16.msrb.mxu0 %v2225_v12  ;;  %506 = vmatpush.bf16.msrb.mxu1 %v2229_v17  ;;  %v2379_v12 = vor.u32 %v2959_v10, %v2378_v9  ;;  %v2387_v17 = vor.u32 %v2960_v15, %v2386_v14  ;;  %v2945_v9 = vld [vmem:[#allocation6 + $0x28] sm:$0xf0]  ;;  %v2306_v14 = vld [vmem:[#allocation6] sm:$0xf] }
  0x49   :  { %v2941_v15 = vld [vmem:[#allocation6 + $0x8] sm:$0xf0] }
  0x4a   :  { %729 = vmatpush.bf16.msrb.mxu2 %v2379_v12  ;;  %v2323_v12 = vor.u32 %v2943_v5, %v2320_v6  ;;  %v2478_v6 = vld [vmem:[#allocation6 + $0x9c] sm:$0xf0] }
  0x4c   :  { %494 = vmatpush.bf16.msrb.mxu0 %v2213_v27  ;;  %507 = vmatpush.bf16.msrb.mxu1 %v2217_v30 }
  0x4e   :  { %730 = vmatpush.bf16.msrb.mxu2 %v2367_v22 }
  0x50   :  { %754 = vmatpush.bf16.msra.mxu0 %v2399_v8 }
  0x54   :  { %755 = vmatpush.bf16.msra.mxu0 %v2387_v17 }
  0xab   :  { %v227_v50 = vpop.f32.mrf.mxu0 }
  0xac   :  { %v257_v55 = vadd.f32 %v227_v50, %v54_v44  ;;  %v240_v56 = vpop.f32.mrf.mxu1 }
  0xad   :  { %v277_v59 = vadd.f32 %v240_v56, %v55_v45 }
  0xae   :  { %v2204_v60 = vmul.f32 -1.442695, %v257_v55 }
  0xaf   :  { %v2205_v63 = vmul.f32 -1.442695, %v277_v59 }
  0xb0   :  { %3095 = vpow2.f32 %v2204_v60 }
  0xb1   :  { %3097 = vpow2.f32 %v2205_v63 }
  0xb3   :  { %v229_v16 = vpop.f32.mrf.mxu0 }
  0xb4   :  { %v242_v21 = vpop.f32.mrf.mxu1  ;;  %v2383_v16 = vor.u32 %v2958_v11, %v2380_v13  ;;  %v2319_v11 = vor.u32 %v2944_v4, %v2318_v3  ;;  %v2327_v13 = vor.u32 %v2945_v9, %v2326_v7  ;;  %v2983_v3 = vld [vmem:[#allocation6 + $0x98] sm:$0xf0]  ;;  %v2982_v4 = vld [vmem:[#allocation6 + $0x94] sm:$0xf]  ;;  %v2484_v7 = vld [vmem:[#allocation6 + $0x98] sm:$0xf] }
  0xb5   :  { %v253_v26 = vpop.f32.mrf.mxu2  ;;  %v2955_v21 = vld [vmem:[#allocation6 + $0x7c] sm:$0xf]  ;;  %v2481_v9 = vor.u32 %v2982_v4, %v2478_v6  ;;  %v2404_v4 = vld [vmem:[#allocation6] sm:$0xf]  ;;  %v2964_v6 = vld [vmem:[#allocation6 + $0x4] sm:$0xf] }
  0xb6   :  { %v3096_v25 = vpop.eup %3095  ;;  %v300_v45 = vadd.f32 %v3293_v38, %v253_v26  ;;  %742 = vmatpush.bf16.msrb.mxu3 %v2383_v16  ;;  %v2371_v26 = vor.u32 %v2955_v21, %v2368_v23  ;;  %v2940_v16 = vld [vmem:[#allocation6 + $0x4] sm:$0xf]  ;;  %v2307_v21 = vor.u32 %v2941_v15, %v2306_v14  ;;  %v2466_v15 = vld [vmem:[#allocation6 + $0x84] sm:$0xf0] }
  0xb7   :  { %v3098_v28 = vpop.eup %3097  ;;  %v261_v29 = vadd.f32 1.0, %v3096_v25  ;;  %v2957_v25 = vld [vmem:[#allocation6 + $0x88] sm:$0xf0] }
  0xb8   :  { %v281_v31 = vadd.f32 1.0, %v3098_v28  ;;  %v2375_v27 = vor.u32 %v2957_v25, %v2374_v24  ;;  %v2315_v24 = vor.u32 %v2942_v20, %v2314_v19 }
  0xb9   :  { %3099 = vrcp.f32 %v261_v29  ;;  %v273_v40 = vand.u32 2147483648, %v261_v29  ;;  %v271_v42 = vand.u32 2147483647, %v261_v29  ;;  %vm267_vm1 = vweird.f32 %v261_v29 }
  0xba   :  { %3101 = vrcp.f32 %v281_v31  ;;  %vm287_vm4 = vweird.f32 %v281_v31  ;;  %v293_v51 = vand.u32 2147483648, %v281_v31  ;;  %v291_v53 = vand.u32 2147483647, %v281_v31  ;;  %743 = vmatpush.bf16.msrb.mxu3 %v2371_v26  ;;  %756 = vmatpush.bf16.msra.mxu0 %v2375_v27 }
  0xbb   :  { %v274_v46 = vor.u32 1.1754944e-38, %v273_v40  ;;  %vm272_vm3 = vcmp.eq.f32.partialorder %v271_v42, 8.507059e+37  ;;  %v310_v42 = vld [vmem:[#allocation3 + $0x18] sm:$0xff] }
  0xbc   :  { %v294_v56 = vor.u32 1.1754944e-38, %v293_v51  ;;  %vm292_vm7 = vcmp.eq.f32.partialorder %v291_v53, 8.507059e+37 }
  0xbd   :  { %v255_v32 = vpop.f32.mrf.mxu2 }
  0xbe   :  { %v2953_v32 = vld [vmem:[#allocation6 + $0x68] sm:$0xf0] }
  0xbf   :  { %v3100_v33 = vpop.eup %3099 }
  0xc0   :  { %v3102_v34 = vpop.eup %3101  ;;  %v263_v35 = vmul.f32 %v3100_v33, %v261_v29  ;;  %vm268_vm0 = vweird.f32 %v3100_v33 }
  0xc1   :  { %v283_v36 = vmul.f32 %v3102_v34, %v281_v31  ;;  %vm269_vm2 = vmor %vm267_vm1, %vm268_vm0  ;;  %vm288_vm5 = vweird.f32 %v3102_v34  ;;  %v2354_v31 = vld [vmem:[#allocation6 + $0x60] sm:$0xf] }
  0xc2   :  { %v264_v37 = vsub.f32 1.0, %v263_v35  ;;  %vm289_vm6 = vmor %vm287_vm4, %vm288_vm5  ;;  %v2356_v35 = vld [vmem:[#allocation6 + $0x6c] sm:$0xf0] }
  0xc3   :  { %v284_v39 = vsub.f32 1.0, %v283_v36  ;;  %v2362_v36 = vld [vmem:[#allocation6 + $0x68] sm:$0xf] }
  0xc4   :  { %v265_v41 = vmul.f32 %v3100_v33, %v264_v37  ;;  %v2954_v37 = vld [vmem:[#allocation6 + $0x70] sm:$0xf0] }
  0xc5   :  { %v285_v43 = vmul.f32 %v3102_v34, %v284_v39 }
  0xc6   :  { %v266_v44 = vadd.f32 %v3100_v33, %v265_v41  ;;  %v2363_v41 = vor.u32 %v2954_v37, %v2362_v36 }
  0xc7   :  { %v286_v50 = vadd.f32 %v3102_v34, %v285_v43  ;;  %v2342_v43 = vld [vmem:[#allocation6 + $0x48] sm:$0xf] }
  0xc8   :  { %v270_v47 = vsel %vm269_vm2, %v3100_v33, %v266_v44  ;;  %v2952_v33 = vld [vmem:[#allocation6 + $0x64] sm:$0xf]  ;;  %757 = vmatpush.bf16.msra.mxu0 %v2363_v41  ;;  %v2950_v44 = vld [vmem:[#allocation6 + $0x50] sm:$0xf0] }
  0xc9   :  { %v275_v49 = vsel %vm272_vm3, %v274_v46, %v270_v47  ;;  %v290_v55 = vsel %vm289_vm6, %v3102_v34, %v286_v50  ;;  %v2355_v34 = vor.u32 %v2953_v32, %v2354_v31  ;;  %v2359_v40 = vor.u32 %v2952_v33, %v2356_v35  ;;  %v2951_v50 = vld [vmem:[#allocation6 + $0x58] sm:$0xf0] }
  0xca   :  { %v301_v52 = vmul.f32 %v300_v45, %v275_v49  ;;  %v295_v57 = vsel %vm292_vm7, %v294_v56, %v290_v55  ;;  %v2949_v45 = vld [vmem:[#allocation6 + $0x4c] sm:$0xf]  ;;  %v2343_v47 = vor.u32 %v2950_v44, %v2342_v43  ;;  %v2350_v49 = vld [vmem:[#allocation6 + $0x50] sm:$0xf]  ;;  %v2947_v55 = vld [vmem:[#allocation6 + $0x38] sm:$0xf0] }
  0xcb   :  { %v304_v58 = vsub.f32 1.0, %v295_v57  ;;  %v306_v61 = vmul.f32 0.0, %v295_v57  ;;  %731 = vmatpush.bf16.msrb.mxu2 %v2355_v34  ;;  %744 = vmatpush.bf16.msrb.mxu3 %v2359_v40  ;;  %v2351_v53 = vor.u32 %v2951_v50, %v2350_v49  ;;  %v2946_v56 = vld [vmem:[#allocation6 + $0x34] sm:$0xf]  ;;  %v312_v43 = vld [vmem:[#allocation3 + $0x28] sm:$0xff] }
  0xcc   :  { %v302_v54 = vadd.f32 %v301_v52, %v56_v48  ;;  %v2344_v48 = vld [vmem:[#allocation6 + $0x54] sm:$0xf0] }
  0xcd   :  { %v2347_v52 = vor.u32 %v2949_v45, %v2344_v48  ;;  %758 = vmatpush.bf16.msra.mxu0 %v2351_v53 }
  0xce   :  { %3103 = vtanh.f32 %v302_v54  ;;  %v2330_v54 = vld [vmem:[#allocation6 + $0x30] sm:$0xf] }
  0xcf   :  { %732 = vmatpush.bf16.msrb.mxu2 %v2343_v47  ;;  %745 = vmatpush.bf16.msrb.mxu3 %v2347_v52 }
  0xd4   :  { %v3104_v59 = vpop.eup %3103 }
  0xd5   :  { %v305_v60 = vmul.f32 %v3104_v59, %v304_v58  ;;  %v2331_v58 = vor.u32 %v2947_v55, %v2330_v54  ;;  %v2332_v59 = vld [vmem:[#allocation6 + $0x3c] sm:$0xf0] }
  0xd6   :  { %v2335_v1 = vor.u32 %v2946_v56, %v2332_v59  ;;  %v2985_v59 = vld [vmem:[#allocation6 + $0xac] sm:$0xf] }
  0xd7   :  { %v3296_v62 = vadd.f32 %v306_v61, %v305_v60  ;;  %v2338_v60 = vld [vmem:[#allocation6 + $0x38] sm:$0xf]  ;;  %v2948_v61 = vld [vmem:[#allocation6 + $0x40] sm:$0xf0]  ;;  %733 = vmatpush.bf16.msrb.mxu2 %v2331_v58  ;;  %v2986_v58 = vld [vmem:[#allocation6 + $0xb0] sm:$0xf0] }
  0xd8   :  { %v2339_v2 = vor.u32 %v2948_v61, %v2338_v60  ;;  %746 = vmatpush.bf16.msrb.mxu3 %v2335_v1  ;;  %v2490_v61 = vld [vmem:[#allocation6 + $0xb4] sm:$0xf0] }
  0xd9   :  { %308 = vst [vmem:[#allocation8] sm:$0xff] %v3296_v62  ;;  %v313_v63 = vpack.c.bf16 %v3296_v62, %v3296_v62  ;;  %v2493_v1 = vor.u32 %v2985_v59, %v2490_v61  ;;  %v2416_v59 = vld [vmem:[#allocation6 + $0x18] sm:$0xf]  ;;  %v2967_v61 = vld [vmem:[#allocation6 + $0x1c] sm:$0xf] }
  0xda   :  { %759 = vmatpush.bf16.msra.mxu0 %v2339_v2 }
  0xdb   :  { %482 = vmatmul.bf16.vlgmr.msra.gmra.mxu3 %v313_v63  ;;  %495 = vmatmul.bf16.vlgmr.msrb.gmra.mxu0 %v313_v63 }
  0xdc   :  { %508 = vmatmul.bf16.vlgmr.msrb.gmra.mxu1 %v313_v63  ;;  %734 = vmatpush.bf16.msrb.mxu2 %v2319_v11  ;;  %v2464_v11 = vld [vmem:[#allocation6 + $0x78] sm:$0xf] }
  0xdd   :  { %747 = vmatpush.bf16.msrb.mxu3 %v2323_v12  ;;  %v2980_v12 = vld [vmem:[#allocation6 + $0x80] sm:$0xf0] }
  0xde   :  { %760 = vmatpush.bf16.msra.mxu0 %v2327_v13  ;;  %v2979_v13 = vld [vmem:[#allocation6 + $0x7c] sm:$0xf]  ;;  %v2465_v14 = vor.u32 %v2980_v12, %v2464_v11  ;;  %v2966_v11 = vld [vmem:[#allocation6 + $0x10] sm:$0xf0] }
  0xe0   :  { %735 = vmatpush.bf16.msrb.mxu2 %v2307_v21  ;;  %v2452_v21 = vld [vmem:[#allocation6 + $0x60] sm:$0xf] }
  0xe2   :  { %761 = vmatpush.bf16.msra.mxu0 %v2315_v24 }
  0xe4   :  { %995 = vmatpush.bf16.msra.mxu2 %v2493_v1  ;;  %v2969_v1 = vld [vmem:[#allocation6 + $0x28] sm:$0xf0] }
  0xe8   :  { %996 = vmatpush.bf16.msra.mxu2 %v2481_v9  ;;  %v2406_v9 = vld [vmem:[#allocation6 + $0xc] sm:$0xf0] }
 0x158   :  { %v496_v28 = vpop.f32.mrf.mxu0 }
 0x159   :  { %v533_v29 = vadd.f32 %v496_v28, %v311_v18  ;;  %v3301_v30 = vpop.f32.mrf.mxu1  ;;  %v2308_v18 = vld [vmem:[#allocation6 + $0xc] sm:$0xf0] }
 0x15a   :  { %v2311_v23 = vor.u32 %v2940_v16, %v2308_v18  ;;  %v553_v40 = vadd.f32 %v3293_v38, %v3301_v30  ;;  %v2472_v16 = vld [vmem:[#allocation6 + $0x80] sm:$0xf]  ;;  %v2469_v18 = vor.u32 %v2979_v13, %v2466_v15 }
 0x15b   :  { %v2303_v39 = vmul.f32 -1.442695, %v533_v29 }
 0x15c   :  { %748 = vmatpush.bf16.msrb.mxu3 %v2311_v23  ;;  %997 = vmatpush.bf16.msra.mxu2 %v2469_v18  ;;  %v2976_v23 = vld [vmem:[#allocation6 + $0x64] sm:$0xf] }
 0x15d   :  { %3105 = vpow2.f32 %v2303_v39 }
 0x15e   :  { %v483_v46 = vpop.f32.mrf.mxu3 }
 0x15f   :  { %v513_v51 = vadd.f32 %v483_v46, %v310_v42 }
 0x160   :  { %v498_v57 = vpop.f32.mrf.mxu0 }
 0x161   :  { %v2302_v63 = vmul.f32 -1.442695, %v513_v51  ;;  %v511_v0 = vpop.f32.mrf.mxu1  ;;  %v2488_v57 = vld [vmem:[#allocation6 + $0xa8] sm:$0xf] }
 0x162   :  { %v2489_v60 = vor.u32 %v2986_v58, %v2488_v57  ;;  %v2987_v0 = vld [vmem:[#allocation6 + $0xb8] sm:$0xf0] }
 0x163   :  { %v3106_v8 = vpop.eup %3105  ;;  %3107 = vpow2.f32 %v2302_v63  ;;  %v2496_v63 = vld [vmem:[#allocation6 + $0xb0] sm:$0xf] }
 0x164   :  { %v537_v10 = vadd.f32 1.0, %v3106_v8  ;;  %v2497_v2 = vor.u32 %v2987_v0, %v2496_v63  ;;  %982 = vmatpush.bf16.msra.mxu1 %v2489_v60  ;;  %v2984_v8 = vld [vmem:[#allocation6 + $0xa0] sm:$0xf0]  ;;  %v2418_v63 = vld [vmem:[#allocation6 + $0x24] sm:$0xf0] }
 0x165   :  { %v2968_v60 = vld [vmem:[#allocation6 + $0x20] sm:$0xf0]  ;;  %v2424_v0 = vld [vmem:[#allocation6 + $0x20] sm:$0xf] }
 0x166   :  { %v485_v17 = vpop.f32.mrf.mxu3  ;;  %3109 = vrcp.f32 %v537_v10  ;;  %v549_v45 = vand.u32 2147483648, %v537_v10  ;;  %vm543_vm13 = vweird.f32 %v537_v10  ;;  %v547_v47 = vand.u32 2147483647, %v537_v10  ;;  %1008 = vmatpush.bf16.msra.mxu3 %v2497_v2 }
 0x167   :  { %v2981_v17 = vld [vmem:[#allocation6 + $0x88] sm:$0xf0]  ;;  %v2417_v2 = vor.u32 %v2968_v60, %v2416_v59  ;;  %v3007_v60 = vld [vmem:[#allocation6 + $0x98] sm:$0xf0] }
 0x168   :  { %v550_v50 = vor.u32 1.1754944e-38, %v549_v45  ;;  %vm548_vm15 = vcmp.eq.f32.partialorder %v547_v47, 8.507059e+37  ;;  %v2473_v19 = vor.u32 %v2981_v17, %v2472_v16  ;;  %v2428_v47 = vld [vmem:[#allocation6 + $0x30] sm:$0xf] }
 0x169   :  { %v3108_v22 = vpop.eup %3107 }
 0x16a   :  { %v517_v25 = vadd.f32 1.0, %v3108_v22  ;;  %v2977_v22 = vld [vmem:[#allocation6 + $0x68] sm:$0xf0] }
 0x16b   :  { %v2453_v24 = vor.u32 %v2977_v22, %v2452_v21 }
 0x16c   :  { %3111 = vrcp.f32 %v517_v25  ;;  %v3110_v26 = vpop.eup %3109  ;;  %v529_v33 = vand.u32 2147483648, %v517_v25  ;;  %v527_v35 = vand.u32 2147483647, %v517_v25  ;;  %vm523_vm9 = vweird.f32 %v517_v25 }
 0x16d   :  { %v539_v27 = vmul.f32 %v3110_v26, %v537_v10  ;;  %vm544_vm12 = vweird.f32 %v3110_v26  ;;  %v2485_v10 = vor.u32 %v2984_v8, %v2484_v7 }
 0x16e   :  { %v530_v39 = vor.u32 1.1754944e-38, %v529_v33  ;;  %vm528_vm11 = vcmp.eq.f32.partialorder %v527_v35, 8.507059e+37  ;;  %vm545_vm14 = vmor %vm543_vm13, %vm544_vm12  ;;  %v2440_v33 = vld [vmem:[#allocation6 + $0x48] sm:$0xf]  ;;  %v2973_v35 = vld [vmem:[#allocation6 + $0x4c] sm:$0xf] }
 0x16f   :  { %v540_v31 = vsub.f32 1.0, %v539_v27  ;;  %1009 = vmatpush.bf16.msra.mxu3 %v2485_v10  ;;  %v2978_v27 = vld [vmem:[#allocation6 + $0x70] sm:$0xf0]  ;;  %v2412_v10 = vld [vmem:[#allocation6 + $0x8] sm:$0xf] }
 0x170   :  { %v2413_v15 = vor.u32 %v2966_v11, %v2412_v10  ;;  %v3005_v10 = vld [vmem:[#allocation6 + $0x88] sm:$0xf0] }
 0x171   :  { %v541_v36 = vmul.f32 %v3110_v26, %v540_v31  ;;  %v564_v31 = vld [vmem:[#allocation3 + $0x30] sm:$0xff] }
 0x172   :  { %v3112_v28 = vpop.eup %3111 }
 0x173   :  { %v519_v29 = vmul.f32 %v3112_v28, %v517_v25  ;;  %vm524_vm8 = vweird.f32 %v3112_v28  ;;  %v542_v44 = vadd.f32 %v3110_v26, %v541_v36  ;;  %1010 = vmatpush.bf16.msra.mxu3 %v2473_v19  ;;  %v2454_v25 = vld [vmem:[#allocation6 + $0x6c] sm:$0xf0] }
 0x174   :  { %vm525_vm10 = vmor %vm523_vm9, %vm524_vm8 }
 0x175   :  { %v520_v32 = vsub.f32 1.0, %v519_v29  ;;  %v546_v49 = vsel %vm545_vm14, %v3110_v26, %v542_v44  ;;  %v2460_v26 = vld [vmem:[#allocation6 + $0x68] sm:$0xf] }
 0x176   :  { %v551_v51 = vsel %vm548_vm15, %v550_v50, %v546_v49  ;;  %v2461_v29 = vor.u32 %v2978_v27, %v2460_v26  ;;  %v2970_v49 = vld [vmem:[#allocation6 + $0x34] sm:$0xf] }
 0x177   :  { %v521_v34 = vmul.f32 %v3112_v28, %v520_v32  ;;  %v557_v52 = vsub.f32 1.0, %v551_v51  ;;  %v559_v54 = vmul.f32 %v551_v51, %v3296_v62  ;;  %v2476_v62 = vld [vmem:[#allocation6 + $0x90] sm:$0xf]  ;;  %v565_v32 = vld [vmem:[#allocation3 + $0x38] sm:$0xff]  ;;  %v2430_v51 = vld [vmem:[#allocation6 + $0x3c] sm:$0xf0] }
 0x178   :  { %v2477_v5 = vor.u32 %v2983_v3, %v2476_v62  ;;  %1011 = vmatpush.bf16.msra.mxu3 %v2461_v29  ;;  %v2433_v57 = vor.u32 %v2970_v49, %v2430_v51  ;;  %v2421_v62 = vor.u32 %v2967_v61, %v2418_v63  ;;  %v2425_v3 = vor.u32 %v2969_v1, %v2424_v0  ;;  %v2586_v51 = vld [vmem:[#allocation6 + $0xa8] sm:$0xf]  ;;  %v3006_v61 = vld [vmem:[#allocation6 + $0x94] sm:$0xf]  ;;  %v2576_v0 = vld [vmem:[#allocation6 + $0x9c] sm:$0xf0] }
 0x179   :  { %v522_v37 = vadd.f32 %v3112_v28, %v521_v34  ;;  %v2974_v34 = vld [vmem:[#allocation6 + $0x50] sm:$0xf0]  ;;  %v2582_v1 = vld [vmem:[#allocation6 + $0x98] sm:$0xf] }
 0x17a   :  { %983 = vmatpush.bf16.msra.mxu1 %v2477_v5  ;;  %v2965_v5 = vld [vmem:[#allocation6 + $0x8] sm:$0xf0] }
 0x17b   :  { %v526_v41 = vsel %vm525_vm10, %v3112_v28, %v522_v37  ;;  %v2457_v28 = vor.u32 %v2976_v23, %v2454_v25  ;;  %v2405_v12 = vor.u32 %v2965_v5, %v2404_v4  ;;  %v2562_v4 = vld [vmem:[#allocation6 + $0x78] sm:$0xf]  ;;  %v3004_v5 = vld [vmem:[#allocation6 + $0x80] sm:$0xf0] }
 0x17c   :  { %v531_v42 = vsel %vm528_vm11, %v530_v39, %v526_v41  ;;  %v2441_v39 = vor.u32 %v2974_v34, %v2440_v33  ;;  %v2448_v41 = vld [vmem:[#allocation6 + $0x50] sm:$0xf] }
 0x17d   :  { %v554_v46 = vmul.f32 %v553_v40, %v531_v42  ;;  %998 = vmatpush.bf16.msra.mxu2 %v2457_v28  ;;  %v2442_v40 = vld [vmem:[#allocation6 + $0x54] sm:$0xf0]  ;;  %v2975_v42 = vld [vmem:[#allocation6 + $0x58] sm:$0xf0] }
 0x17e   :  { %984 = vmatpush.bf16.msra.mxu1 %v2465_v14  ;;  %v2445_v45 = vor.u32 %v2973_v35, %v2442_v40  ;;  %v2409_v14 = vor.u32 %v2964_v6, %v2406_v9  ;;  %v3003_v6 = vld [vmem:[#allocation6 + $0x7c] sm:$0xf]  ;;  %v2570_v9 = vld [vmem:[#allocation6 + $0x80] sm:$0xf] }
 0x17f   :  { %v555_v48 = vadd.f32 %v554_v46, %v312_v43  ;;  %v2449_v46 = vor.u32 %v2975_v42, %v2448_v41 }
 0x181   :  { %3113 = vtanh.f32 %v555_v48  ;;  %v2971_v48 = vld [vmem:[#allocation6 + $0x38] sm:$0xf0]  ;;  %999 = vmatpush.bf16.msra.mxu2 %v2445_v45  ;;  %1012 = vmatpush.bf16.msra.mxu3 %v2449_v46 }
 0x182   :  { %985 = vmatpush.bf16.msra.mxu1 %v2453_v24  ;;  %v2429_v50 = vor.u32 %v2971_v48, %v2428_v47 }
 0x185   :  { %1000 = vmatpush.bf16.msra.mxu2 %v2433_v57  ;;  %v3011_v57 = vld [vmem:[#allocation6 + $0xb8] sm:$0xf0] }
 0x186   :  { %986 = vmatpush.bf16.msra.mxu1 %v2441_v39 }
 0x187   :  { %v3114_v53 = vpop.eup %3113 }
 0x188   :  { %v558_v30 = vmul.f32 %v3114_v53, %v557_v52  ;;  %v2436_v52 = vld [vmem:[#allocation6 + $0x38] sm:$0xf]  ;;  %v2972_v53 = vld [vmem:[#allocation6 + $0x40] sm:$0xf0] }
 0x189   :  { %v2437_v58 = vor.u32 %v2972_v53, %v2436_v52  ;;  %1001 = vmatpush.bf16.msra.mxu2 %v2421_v62  ;;  %v3010_v52 = vld [vmem:[#allocation6 + $0xb0] sm:$0xf0]  ;;  %v3009_v53 = vld [vmem:[#allocation6 + $0xac] sm:$0xf]  ;;  %v2579_v62 = vor.u32 %v3006_v61, %v2576_v0  ;;  %v2502_v61 = vld [vmem:[#allocation6] sm:$0xf] }
 0x18a   :  { %v3306_v55 = vadd.f32 %v559_v54, %v558_v30  ;;  %987 = vmatpush.bf16.msra.mxu1 %v2429_v50  ;;  %v2988_v0 = vld [vmem:[#allocation6 + $0x4] sm:$0xf] }
 0x18b   :  { %1013 = vmatpush.bf16.msra.mxu3 %v2437_v58 }
 0x18c   :  { %562 = vst [vmem:[#allocation8 + $0x8] sm:$0xff] %v3306_v55  ;;  %v567_v56 = vpack.c.bf16 %v3306_v55, %v3306_v55 }
 0x18d   :  { %1002 = vmatpush.bf16.msra.mxu2 %v2409_v14  ;;  %v3001_v14 = vld [vmem:[#allocation6 + $0x68] sm:$0xf0] }
 0x18e   :  { %736 = vmatmul.bf16.vlgmr.msrb.gmra.mxu2 %v567_v56  ;;  %749 = vmatmul.bf16.vlgmr.msrb.gmra.mxu3 %v567_v56 }
 0x18f   :  { %762 = vmatmul.bf16.vlgmr.msra.gmra.mxu0 %v567_v56  ;;  %988 = vmatpush.bf16.msra.mxu1 %v2417_v2  ;;  %v3008_v2 = vld [vmem:[#allocation6 + $0xa0] sm:$0xf0] }
 0x190   :  { %1014 = vmatpush.bf16.msra.mxu3 %v2425_v3  ;;  %v2583_v3 = vor.u32 %v3008_v2, %v2582_v1 }
 0x193   :  { %989 = vmatpush.bf16.msra.mxu1 %v2405_v12  ;;  %v2571_v12 = vor.u32 %v3005_v10, %v2570_v9 }
 0x194   :  { %1015 = vmatpush.bf16.msra.mxu3 %v2413_v15  ;;  %v3000_v15 = vld [vmem:[#allocation6 + $0x64] sm:$0xf] }
 0x20c   :  { %v3311_v20 = vpop.f32.mrf.mxu0 }
 0x20d   :  { %v807_v33 = vadd.f32 %v3293_v38, %v3311_v20 }
 0x211   :  { %v737_v36 = vpop.f32.mrf.mxu2  ;;  %v750_v37 = vpop.f32.mrf.mxu3 }
 0x212   :  { %v767_v43 = vadd.f32 %v737_v36, %v564_v31  ;;  %v787_v44 = vadd.f32 %v750_v37, %v565_v32  ;;  %v566_v37 = vld [vmem:[#allocation3 + $0x40] sm:$0xff] }
 0x214   :  { %v2400_v30 = vmul.f32 -1.442695, %v767_v43  ;;  %v2401_v54 = vmul.f32 -1.442695, %v787_v44  ;;  %v765_v56 = vpop.f32.mrf.mxu0 }
 0x215   :  { %v2594_v56 = vld [vmem:[#allocation6 + $0xb0] sm:$0xf] }
 0x216   :  { %3115 = vpow2.f32 %v2400_v30  ;;  %v2587_v30 = vor.u32 %v3010_v52, %v2586_v51  ;;  %v2595_v59 = vor.u32 %v3011_v57, %v2594_v56  ;;  %v2514_v51 = vld [vmem:[#allocation6 + $0x18] sm:$0xf]  ;;  %v2992_v52 = vld [vmem:[#allocation6 + $0x20] sm:$0xf0]  ;;  %v2516_v56 = vld [vmem:[#allocation6 + $0x24] sm:$0xf0] }
 0x217   :  { %3117 = vpow2.f32 %v2401_v54  ;;  %v2588_v54 = vld [vmem:[#allocation6 + $0xb4] sm:$0xf0]  ;;  %v2522_v57 = vld [vmem:[#allocation6 + $0x20] sm:$0xf] }
 0x218   :  { %v2591_v58 = vor.u32 %v3009_v53, %v2588_v54  ;;  %1236 = vmatpush.bf16.msrb.mxu0 %v2587_v30  ;;  %1262 = vmatpush.bf16.msrb.mxu2 %v2595_v59  ;;  %v2991_v53 = vld [vmem:[#allocation6 + $0x1c] sm:$0xf]  ;;  %v2515_v54 = vor.u32 %v2992_v52, %v2514_v51 }
 0x219   :  { %v739_v7 = vpop.f32.mrf.mxu2  ;;  %v752_v8 = vpop.f32.mrf.mxu3 }
 0x21a   :  { %1249 = vmatpush.bf16.msrb.mxu1 %v2591_v58  ;;  %v2563_v7 = vor.u32 %v3004_v5, %v2562_v4  ;;  %v2564_v8 = vld [vmem:[#allocation6 + $0x84] sm:$0xf0]  ;;  %v2993_v58 = vld [vmem:[#allocation6 + $0x28] sm:$0xf0]  ;;  %v2990_v4 = vld [vmem:[#allocation6 + $0x10] sm:$0xf0] }
 0x21b   :  { %v2567_v11 = vor.u32 %v3003_v6, %v2564_v8 }
 0x21c   :  { %v3116_v13 = vpop.eup %3115  ;;  %1263 = vmatpush.bf16.msrb.mxu2 %v2583_v3  ;;  %v2510_v3 = vld [vmem:[#allocation6 + $0x8] sm:$0xf] }
 0x21d   :  { %v3118_v16 = vpop.eup %3117  ;;  %v771_v17 = vadd.f32 1.0, %v3116_v13  ;;  %v2550_v13 = vld [vmem:[#allocation6 + $0x60] sm:$0xf] }
 0x21e   :  { %v791_v18 = vadd.f32 1.0, %v3118_v16  ;;  %1250 = vmatpush.bf16.msrb.mxu1 %v2579_v62  ;;  %v2551_v16 = vor.u32 %v3001_v14, %v2550_v13  ;;  %v2504_v62 = vld [vmem:[#allocation6 + $0xc] sm:$0xf0] }
 0x21f   :  { %3119 = vrcp.f32 %v771_v17  ;;  %v783_v25 = vand.u32 2147483648, %v771_v17  ;;  %v781_v28 = vand.u32 2147483647, %v771_v17  ;;  %vm777_vm1 = vweird.f32 %v771_v17 }
 0x220   :  { %3121 = vrcp.f32 %v791_v18  ;;  %v803_v40 = vand.u32 2147483648, %v791_v18  ;;  %vm797_vm5 = vweird.f32 %v791_v18  ;;  %v801_v41 = vand.u32 2147483647, %v791_v18  ;;  %1264 = vmatpush.bf16.msrb.mxu2 %v2571_v12 }
 0x221   :  { %v784_v32 = vor.u32 1.1754944e-38, %v783_v25  ;;  %vm782_vm3 = vcmp.eq.f32.partialorder %v781_v28, 8.507059e+37  ;;  %v2998_v25 = vld [vmem:[#allocation6 + $0x50] sm:$0xf0]  ;;  %v2507_v6 = vor.u32 %v2988_v0, %v2504_v62  ;;  %v3029_v62 = vld [vmem:[#allocation6 + $0x88] sm:$0xf0] }
 0x222   :  { %v804_v44 = vor.u32 1.1754944e-38, %v803_v40  ;;  %vm802_vm7 = vcmp.eq.f32.partialorder %v801_v41, 8.507059e+37  ;;  %1251 = vmatpush.bf16.msrb.mxu1 %v2567_v11  ;;  %v2995_v40 = vld [vmem:[#allocation6 + $0x38] sm:$0xf0] }
 0x225   :  { %v3120_v19 = vpop.eup %3119 }
 0x226   :  { %v3122_v21 = vpop.eup %3121  ;;  %v773_v22 = vmul.f32 %v3120_v19, %v771_v17  ;;  %vm778_vm0 = vweird.f32 %v3120_v19  ;;  %v2552_v17 = vld [vmem:[#allocation6 + $0x6c] sm:$0xf0] }
 0x227   :  { %v793_v23 = vmul.f32 %v3122_v21, %v791_v18  ;;  %vm779_vm2 = vmor %vm777_vm1, %vm778_vm0  ;;  %vm798_vm4 = vweird.f32 %v3122_v21  ;;  %v2558_v18 = vld [vmem:[#allocation6 + $0x68] sm:$0xf] }
 0x228   :  { %v774_v24 = vsub.f32 1.0, %v773_v22  ;;  %vm799_vm6 = vmor %vm797_vm5, %vm798_vm4 }
 0x229   :  { %v794_v26 = vsub.f32 1.0, %v793_v23  ;;  %v818_v23 = vld [vmem:[#allocation3 + $0x48] sm:$0xff] }
 0x22a   :  { %v775_v27 = vmul.f32 %v3120_v19, %v774_v24  ;;  %v2538_v24 = vld [vmem:[#allocation6 + $0x48] sm:$0xf] }
 0x22b   :  { %v795_v29 = vmul.f32 %v3122_v21, %v794_v26  ;;  %v2997_v26 = vld [vmem:[#allocation6 + $0x4c] sm:$0xf]  ;;  %v2539_v28 = vor.u32 %v2998_v25, %v2538_v24 }
 0x22c   :  { %v776_v31 = vadd.f32 %v3120_v19, %v775_v27 }
 0x22d   :  { %v796_v36 = vadd.f32 %v3122_v21, %v795_v29  ;;  %v2540_v29 = vld [vmem:[#allocation6 + $0x54] sm:$0xf0] }
 0x22e   :  { %v780_v34 = vsel %vm779_vm2, %v3120_v19, %v776_v31  ;;  %v3002_v19 = vld [vmem:[#allocation6 + $0x70] sm:$0xf0]  ;;  %v2546_v31 = vld [vmem:[#allocation6 + $0x50] sm:$0xf] }
 0x22f   :  { %v785_v35 = vsel %vm782_vm3, %v784_v32, %v780_v34  ;;  %v800_v43 = vsel %vm799_vm6, %v3122_v21, %v796_v36  ;;  %v2555_v21 = vor.u32 %v3000_v15, %v2552_v17  ;;  %v2559_v22 = vor.u32 %v3002_v19, %v2558_v18  ;;  %v2999_v32 = vld [vmem:[#allocation6 + $0x58] sm:$0xf0]  ;;  %v819_v36 = vld [vmem:[#allocation3 + $0x50] sm:$0xff] }
 0x230   :  { %v808_v39 = vmul.f32 %v807_v33, %v785_v35  ;;  %v805_v45 = vsel %vm802_vm7, %v804_v44, %v800_v43  ;;  %v2543_v34 = vor.u32 %v2997_v26, %v2540_v29  ;;  %v2547_v35 = vor.u32 %v2999_v32, %v2546_v31  ;;  %v2528_v43 = vld [vmem:[#allocation6 + $0x3c] sm:$0xf0]  ;;  %v2534_v44 = vld [vmem:[#allocation6 + $0x38] sm:$0xf] }
 0x231   :  { %v811_v46 = vsub.f32 1.0, %v805_v45  ;;  %v813_v48 = vmul.f32 %v805_v45, %v3306_v55  ;;  %v2574_v55 = vld [vmem:[#allocation6 + $0x90] sm:$0xf]  ;;  %1252 = vmatpush.bf16.msrb.mxu1 %v2555_v21  ;;  %1265 = vmatpush.bf16.msrb.mxu2 %v2559_v22  ;;  %v820_v26 = vld [vmem:[#allocation3 + $0x58] sm:$0xff] }
 0x232   :  { %v809_v42 = vadd.f32 %v808_v39, %v566_v37  ;;  %v2575_v63 = vor.u32 %v3007_v60, %v2574_v55  ;;  %v2526_v39 = vld [vmem:[#allocation6 + $0x30] sm:$0xf]  ;;  %v2519_v55 = vor.u32 %v2991_v53, %v2516_v56  ;;  %v2523_v60 = vor.u32 %v2993_v58, %v2522_v57  ;;  %v3031_v53 = vld [vmem:[#allocation6 + $0x98] sm:$0xf0]  ;;  %v2674_v56 = vld [vmem:[#allocation6 + $0x9c] sm:$0xf0] }
 0x233   :  { %v2527_v41 = vor.u32 %v2995_v40, %v2526_v39  ;;  %v2680_v57 = vld [vmem:[#allocation6 + $0x98] sm:$0xf]  ;;  %v3032_v58 = vld [vmem:[#allocation6 + $0xa0] sm:$0xf0] }
 0x234   :  { %3123 = vtanh.f32 %v809_v42  ;;  %1237 = vmatpush.bf16.msrb.mxu0 %v2575_v63  ;;  %v2994_v42 = vld [vmem:[#allocation6 + $0x34] sm:$0xf]  ;;  %v2989_v63 = vld [vmem:[#allocation6 + $0x8] sm:$0xf0] }
 0x235   :  { %1253 = vmatpush.bf16.msrb.mxu1 %v2543_v34  ;;  %1266 = vmatpush.bf16.msrb.mxu2 %v2547_v35  ;;  %v2531_v45 = vor.u32 %v2994_v42, %v2528_v43  ;;  %v2503_v2 = vor.u32 %v2989_v63, %v2502_v61  ;;  %v3028_v61 = vld [vmem:[#allocation6 + $0x80] sm:$0xf0]  ;;  %v3027_v63 = vld [vmem:[#allocation6 + $0x7c] sm:$0xf] }
 0x238   :  { %1238 = vmatpush.bf16.msrb.mxu0 %v2563_v7  ;;  %v2511_v7 = vor.u32 %v2990_v4, %v2510_v3 }
 0x239   :  { %1254 = vmatpush.bf16.msrb.mxu1 %v2531_v45  ;;  %v3034_v45 = vld [vmem:[#allocation6 + $0xb0] sm:$0xf0] }
 0x23a   :  { %v3124_v47 = vpop.eup %3123 }
 0x23b   :  { %v812_v20 = vmul.f32 %v3124_v47, %v811_v46  ;;  %v2996_v46 = vld [vmem:[#allocation6 + $0x40] sm:$0xf0] }
 0x23c   :  { %1239 = vmatpush.bf16.msrb.mxu0 %v2551_v16 }
 0x23d   :  { %v3316_v49 = vadd.f32 %v813_v48, %v812_v20  ;;  %v2535_v20 = vor.u32 %v2996_v46, %v2534_v44  ;;  %1255 = vmatpush.bf16.msrb.mxu1 %v2519_v55  ;;  %v2684_v44 = vld [vmem:[#allocation6 + $0xa8] sm:$0xf]  ;;  %v3033_v46 = vld [vmem:[#allocation6 + $0xac] sm:$0xf]  ;;  %v2681_v55 = vor.u32 %v3032_v58, %v2680_v57 }
 0x23f   :  { %816 = vst [vmem:[#allocation8 + $0x10] sm:$0xff] %v3316_v49  ;;  %v821_v50 = vpack.c.bf16 %v3316_v49, %v3316_v49  ;;  %1267 = vmatpush.bf16.msrb.mxu2 %v2535_v20  ;;  %v2686_v20 = vld [vmem:[#allocation6 + $0xb4] sm:$0xf0] }
 0x240   :  { %1240 = vmatpush.bf16.msrb.mxu0 %v2539_v28  ;;  %v2689_v51 = vor.u32 %v3033_v46, %v2686_v20  ;;  %v3015_v46 = vld [vmem:[#allocation6 + $0x1c] sm:$0xf] }
 0x241   :  { %990 = vmatmul.bf16.vlgmr.msra.gmra.mxu1 %v821_v50  ;;  %1003 = vmatmul.bf16.vlgmr.msra.gmra.mxu2 %v821_v50 }
 0x242   :  { %1016 = vmatmul.bf16.vlgmr.msra.gmra.mxu3 %v821_v50  ;;  %1256 = vmatpush.bf16.msrb.mxu1 %v2507_v6  ;;  %v3025_v6 = vld [vmem:[#allocation6 + $0x68] sm:$0xf0] }
 0x243   :  { %1268 = vmatpush.bf16.msrb.mxu2 %v2523_v60  ;;  %v2660_v60 = vld [vmem:[#allocation6 + $0x78] sm:$0xf] }
 0x244   :  { %1241 = vmatpush.bf16.msrb.mxu0 %v2527_v41  ;;  %v2661_v0 = vor.u32 %v3028_v61, %v2660_v60  ;;  %v3014_v60 = vld [vmem:[#allocation6 + $0x10] sm:$0xf0] }
 0x247   :  { %1269 = vmatpush.bf16.msrb.mxu2 %v2511_v7  ;;  %v3024_v7 = vld [vmem:[#allocation6 + $0x64] sm:$0xf] }
 0x248   :  { %1242 = vmatpush.bf16.msrb.mxu0 %v2515_v54 }
 0x24c   :  { %1243 = vmatpush.bf16.msrb.mxu0 %v2503_v2  ;;  %v2668_v2 = vld [vmem:[#allocation6 + $0x80] sm:$0xf] }
 0x24d   :  { %v2669_v4 = vor.u32 %v3029_v62, %v2668_v2 }
 0x250   :  { %1503 = vmatpush.bf16.msra.mxu0 %v2689_v51  ;;  %v2620_v51 = vld [vmem:[#allocation6 + $0x20] sm:$0xf] }
 0x2be   :  { %v991_v27 = vpop.f32.mrf.mxu1 }
 0x2bf   :  { %v1021_v33 = vadd.f32 %v991_v27, %v818_v23 }
 0x2c1   :  { %v2498_v37 = vmul.f32 -1.442695, %v1021_v33 }
 0x2c3   :  { %3125 = vpow2.f32 %v2498_v37 }
 0x2c4   :  { %v1004_v47 = vpop.f32.mrf.mxu2 }
 0x2c5   :  { %v1041_v48 = vadd.f32 %v1004_v47, %v819_v36  ;;  %v1017_v50 = vpop.f32.mrf.mxu3  ;;  %v2685_v47 = vor.u32 %v3034_v45, %v2684_v44  ;;  %v2612_v44 = vld [vmem:[#allocation6 + $0x18] sm:$0xf]  ;;  %v3016_v45 = vld [vmem:[#allocation6 + $0x20] sm:$0xf0] }
 0x2c6   :  { %v993_v30 = vpop.f32.mrf.mxu1  ;;  %v1061_v25 = vadd.f32 %v3293_v38, %v1017_v50  ;;  %v3035_v50 = vld [vmem:[#allocation6 + $0xb8] sm:$0xf0] }
 0x2c7   :  { %v2499_v59 = vmul.f32 -1.442695, %v1041_v48  ;;  %v2692_v48 = vld [vmem:[#allocation6 + $0xb0] sm:$0xf]  ;;  %1490 = vmatpush.bf16.msrb.mxu3 %v2685_v47  ;;  %v3030_v30 = vld [vmem:[#allocation6 + $0x94] sm:$0xf] }
 0x2c8   :  { %v2693_v52 = vor.u32 %v3035_v50, %v2692_v48  ;;  %v2613_v48 = vor.u32 %v3016_v45, %v2612_v44  ;;  %v2614_v50 = vld [vmem:[#allocation6 + $0x24] sm:$0xf0] }
 0x2c9   :  { %v3126_v1 = vpop.eup %3125  ;;  %3127 = vpow2.f32 %v2499_v59  ;;  %v2677_v59 = vor.u32 %v3030_v30, %v2674_v56  ;;  %v2600_v30 = vld [vmem:[#allocation6] sm:$0xf]  ;;  %v3012_v56 = vld [vmem:[#allocation6 + $0x4] sm:$0xf] }
 0x2ca   :  { %v1025_v5 = vadd.f32 1.0, %v3126_v1  ;;  %1516 = vmatpush.bf16.msra.mxu1 %v2693_v52  ;;  %v2662_v1 = vld [vmem:[#allocation6 + $0x84] sm:$0xf0]  ;;  %v3017_v52 = vld [vmem:[#allocation6 + $0x28] sm:$0xf0] }
 0x2cb   :  { %1504 = vmatpush.bf16.msra.mxu0 %v2677_v59  ;;  %v2665_v3 = vor.u32 %v3027_v63, %v2662_v1  ;;  %v2602_v59 = vld [vmem:[#allocation6 + $0xc] sm:$0xf0] }
 0x2cc   :  { %3129 = vrcp.f32 %v1025_v5  ;;  %v1006_v8 = vpop.f32.mrf.mxu2  ;;  %v1037_v15 = vand.u32 2147483648, %v1025_v5  ;;  %v1035_v17 = vand.u32 2147483647, %v1025_v5  ;;  %vm1031_vm9 = vweird.f32 %v1025_v5 }
 0x2cd   :  { %v1019_v9 = vpop.f32.mrf.mxu3 }
 0x2ce   :  { %v1038_v22 = vor.u32 1.1754944e-38, %v1037_v15  ;;  %vm1036_vm11 = vcmp.eq.f32.partialorder %v1035_v17, 8.507059e+37  ;;  %1517 = vmatpush.bf16.msra.mxu1 %v2681_v55  ;;  %v2650_v9 = vld [vmem:[#allocation6 + $0x6c] sm:$0xf0]  ;;  %v3022_v17 = vld [vmem:[#allocation6 + $0x50] sm:$0xf0] }
 0x2cf   :  { %v3128_v10 = vpop.eup %3127  ;;  %1505 = vmatpush.bf16.msra.mxu0 %v2665_v3  ;;  %v2608_v55 = vld [vmem:[#allocation6 + $0x8] sm:$0xf] }
 0x2d0   :  { %v1045_v11 = vadd.f32 1.0, %v3128_v10  ;;  %v2656_v10 = vld [vmem:[#allocation6 + $0x68] sm:$0xf]  ;;  %v2609_v1 = vor.u32 %v3014_v60, %v2608_v55  ;;  %v3053_v55 = vld [vmem:[#allocation6 + $0x88] sm:$0xf0] }
 0x2d2   :  { %v3130_v12 = vpop.eup %3129  ;;  %3131 = vrcp.f32 %v1045_v11  ;;  %v1057_v29 = vand.u32 2147483648, %v1045_v11  ;;  %v1055_v32 = vand.u32 2147483647, %v1045_v11  ;;  %vm1051_vm13 = vweird.f32 %v1045_v11  ;;  %1518 = vmatpush.bf16.msra.mxu1 %v2669_v4 }
 0x2d3   :  { %v1027_v13 = vmul.f32 %v3130_v12, %v1025_v5  ;;  %vm1032_vm8 = vweird.f32 %v3130_v12  ;;  %v2648_v5 = vld [vmem:[#allocation6 + $0x60] sm:$0xf] }
 0x2d4   :  { %vm1033_vm10 = vmor %vm1031_vm9, %vm1032_vm8  ;;  %v1058_v35 = vor.u32 1.1754944e-38, %v1057_v29  ;;  %vm1056_vm15 = vcmp.eq.f32.partialorder %v1055_v32, 8.507059e+37  ;;  %v2649_v8 = vor.u32 %v3025_v6, %v2648_v5 }
 0x2d5   :  { %v1028_v14 = vsub.f32 1.0, %v1027_v13  ;;  %v1072_v13 = vld [vmem:[#allocation3 + $0x60] sm:$0xff] }
 0x2d7   :  { %v1029_v16 = vmul.f32 %v3130_v12, %v1028_v14  ;;  %v1073_v14 = vld [vmem:[#allocation3 + $0x68] sm:$0xff] }
 0x2d8   :  { %v3132_v18 = vpop.eup %3131 }
 0x2d9   :  { %v1047_v19 = vmul.f32 %v3132_v18, %v1045_v11  ;;  %v1030_v21 = vadd.f32 %v3130_v12, %v1029_v16  ;;  %vm1052_vm12 = vweird.f32 %v3132_v18  ;;  %v2653_v11 = vor.u32 %v3024_v7, %v2650_v9  ;;  %v2636_v16 = vld [vmem:[#allocation6 + $0x48] sm:$0xf] }
 0x2da   :  { %vm1053_vm14 = vmor %vm1051_vm13, %vm1052_vm12 }
 0x2db   :  { %v1048_v23 = vsub.f32 1.0, %v1047_v19  ;;  %v1034_v24 = vsel %vm1033_vm10, %v3130_v12, %v1030_v21  ;;  %v3026_v12 = vld [vmem:[#allocation6 + $0x70] sm:$0xf0]  ;;  %1506 = vmatpush.bf16.msra.mxu0 %v2653_v11 }
 0x2dc   :  { %v1039_v27 = vsel %vm1036_vm11, %v1038_v22, %v1034_v24  ;;  %v2657_v15 = vor.u32 %v3026_v12, %v2656_v10  ;;  %v2637_v22 = vor.u32 %v3022_v17, %v2636_v16  ;;  %v2644_v24 = vld [vmem:[#allocation6 + $0x50] sm:$0xf]  ;;  %v3331_v16 = vld [vmem:[%s3367_s2] ss:$0 sm:$0xff]  ;;  %s3261_s2 = smov [#allocation8]  }
 0x2dd   :  { %v1049_v28 = vmul.f32 %v3132_v18, %v1048_v23  ;;  %v1062_v31 = vmul.f32 %v1061_v25, %v1039_v27  ;;  %v2638_v23 = vld [vmem:[#allocation6 + $0x54] sm:$0xf0]  ;;  %v3023_v25 = vld [vmem:[#allocation6 + $0x58] sm:$0xf0]  ;;  %s2092_s28 = sshll.u32 %s3261_s2, 4  ;;  %s2093_s28 = int_to_ptr.vmem [resolvable:$true] %s2092_s28 }
 0x2de   :  { %1519 = vmatpush.bf16.msra.mxu1 %v2657_v15  ;;  %v2645_v29 = vor.u32 %v3023_v25, %v2644_v24 }
 0x2df   :  { %v1050_v33 = vadd.f32 %v3132_v18, %v1049_v28  ;;  %v1063_v34 = vadd.f32 %v1062_v31, %v820_v26 }
 0x2e1   :  { %v1054_v36 = vsel %vm1053_vm14, %v3132_v18, %v1050_v33  ;;  %3133 = vtanh.f32 %v1063_v34  ;;  %v3021_v18 = vld [vmem:[#allocation6 + $0x4c] sm:$0xf]  ;;  %v2624_v33 = vld [vmem:[#allocation6 + $0x30] sm:$0xf]  ;;  %v3019_v34 = vld [vmem:[#allocation6 + $0x38] sm:$0xf0] }
 0x2e2   :  { %v1059_v37 = vsel %vm1056_vm15, %v1058_v35, %v1054_v36  ;;  %v2641_v28 = vor.u32 %v3021_v18, %v2638_v23  ;;  %1520 = vmatpush.bf16.msra.mxu1 %v2645_v29  ;;  %v3018_v35 = vld [vmem:[#allocation6 + $0x34] sm:$0xf]  ;;  %v2626_v36 = vld [vmem:[#allocation6 + $0x3c] sm:$0xf0] }
 0x2e3   :  { %v1065_v39 = vsub.f32 1.0, %v1059_v37  ;;  %v1067_v38 = vmul.f32 %v1059_v37, %v3316_v49  ;;  %v2672_v49 = vld [vmem:[#allocation6 + $0x90] sm:$0xf]  ;;  %v2625_v37 = vor.u32 %v3019_v34, %v2624_v33 }
 0x2e4   :  { %v2673_v54 = vor.u32 %v3031_v53, %v2672_v49  ;;  %1507 = vmatpush.bf16.msra.mxu0 %v2641_v28  ;;  %v2617_v49 = vor.u32 %v3015_v46, %v2614_v50  ;;  %v2621_v53 = vor.u32 %v3017_v52, %v2620_v51  ;;  %v3055_v46 = vld [vmem:[#allocation6 + $0x98] sm:$0xf0]  ;;  %v2778_v50 = vld [vmem:[#allocation6 + $0x98] sm:$0xf]  ;;  %v3056_v51 = vld [vmem:[#allocation6 + $0xa0] sm:$0xf0] }
 0x2e6   :  { %1491 = vmatpush.bf16.msrb.mxu3 %v2673_v54  ;;  %v3013_v54 = vld [vmem:[#allocation6 + $0x8] sm:$0xf0] }
 0x2e7   :  { %v3134_v40 = vpop.eup %3133  ;;  %v2601_v58 = vor.u32 %v3013_v54, %v2600_v30  ;;  %v2758_v30 = vld [vmem:[#allocation6 + $0x78] sm:$0xf]  ;;  %v3052_v54 = vld [vmem:[#allocation6 + $0x80] sm:$0xf0] }
 0x2e8   :  { %v1066_v41 = vmul.f32 %v3134_v40, %v1065_v39  ;;  %v2629_v39 = vor.u32 %v3018_v35, %v2626_v36  ;;  %v2632_v40 = vld [vmem:[#allocation6 + $0x38] sm:$0xf]  ;;  %v2782_v36 = vld [vmem:[#allocation6 + $0xa8] sm:$0xf] }
 0x2ea   :  { %v3323_v42 = vadd.f32 %v1067_v38, %v1066_v41  ;;  %1492 = vmatpush.bf16.msrb.mxu3 %v2661_v0  ;;  %v3020_v41 = vld [vmem:[#allocation6 + $0x40] sm:$0xf0]  ;;  %1508 = vmatpush.bf16.msra.mxu0 %v2629_v39  ;;  %v2605_v0 = vor.u32 %v3012_v56, %v2602_v59  ;;  %v3057_v39 = vld [vmem:[#allocation6 + $0xac] sm:$0xf]  ;;  %v3051_v56 = vld [vmem:[#allocation6 + $0x7c] sm:$0xf] }
 0x2eb   :  { %v2633_v38 = vor.u32 %v3020_v41, %v2632_v40  ;;  %v2784_v41 = vld [vmem:[#allocation6 + $0xb4] sm:$0xf0]  ;;  %v2766_v59 = vld [vmem:[#allocation6 + $0x80] sm:$0xf] }
 0x2ec   :  { %1070 = vst [vmem:[#allocation8 + $0x18] sm:$0xff] %v3323_v42  ;;  %v1075_v43 = vpack.c.bf16 %v3323_v42, %v3323_v42  ;;  %v2787_v44 = vor.u32 %v3057_v39, %v2784_v41  ;;  %v3040_v41 = vld [vmem:[#allocation6 + $0x20] sm:$0xf0] }
 0x2ed   :  { %1521 = vmatpush.bf16.msra.mxu1 %v2633_v38  ;;  %v2790_v38 = vld [vmem:[#allocation6 + $0xb0] sm:$0xf] }
 0x2ee   :  { %1244 = vmatmul.bf16.vlgmr.msrb.gmra.mxu0 %v1075_v43  ;;  %1257 = vmatmul.bf16.vlgmr.msrb.gmra.mxu1 %v1075_v43 }
 0x2ef   :  { %1270 = vmatmul.bf16.vlgmr.msrb.gmra.mxu2 %v1075_v43  ;;  %1493 = vmatpush.bf16.msrb.mxu3 %v2649_v8 }
 0x2f0   :  { %1509 = vmatpush.bf16.msra.mxu0 %v2617_v49  ;;  %v2779_v49 = vor.u32 %v3056_v51, %v2778_v50  ;;  %v2698_v50 = vld [vmem:[#allocation6] sm:$0xf]  ;;  %v3037_v51 = vld [vmem:[#allocation6 + $0x8] sm:$0xf0] }
 0x2f1   :  { %1522 = vmatpush.bf16.msra.mxu1 %v2621_v53  ;;  %v1327_v53 = vld [vmem:[#allocation3 + $0x80] sm:$0xff] }
 0x2f3   :  { %1494 = vmatpush.bf16.msrb.mxu3 %v2637_v22 }
 0x2f4   :  { %1510 = vmatpush.bf16.msra.mxu0 %v2605_v0 }
 0x2f5   :  { %1523 = vmatpush.bf16.msra.mxu1 %v2609_v1 }
 0x2f7   :  { %1495 = vmatpush.bf16.msrb.mxu3 %v2625_v37  ;;  %v3058_v37 = vld [vmem:[#allocation6 + $0xb0] sm:$0xf0] }
 0x2f8   :  { %v2783_v40 = vor.u32 %v3058_v37, %v2782_v36 }
 0x2fa   :  { %1744 = vmatpush.bf16.msra.mxu2 %v2783_v40  ;;  %v2710_v40 = vld [vmem:[#allocation6 + $0x18] sm:$0xf] }
 0x2fb   :  { %1496 = vmatpush.bf16.msrb.mxu3 %v2613_v48  ;;  %v2772_v48 = vld [vmem:[#allocation6 + $0x9c] sm:$0xf0] }
 0x2ff   :  { %1497 = vmatpush.bf16.msrb.mxu3 %v2601_v58  ;;  %v2760_v58 = vld [vmem:[#allocation6 + $0x84] sm:$0xf0] }
 0x300   :  { %v2763_v60 = vor.u32 %v3051_v56, %v2760_v58  ;;  %v2699_v56 = vor.u32 %v3037_v51, %v2698_v50  ;;  %v2858_v51 = vld [vmem:[#allocation6 + $0x84] sm:$0xf0] }
 0x303   :  { %1757 = vmatpush.bf16.msra.mxu3 %v2787_v44  ;;  %v2718_v44 = vld [vmem:[#allocation6 + $0x20] sm:$0xf] }
 0x36b   :  { %v1245_v19 = vpop.f32.mrf.mxu0  ;;  %v1258_v21 = vpop.f32.mrf.mxu1 }
 0x36c   :  { %v1275_v26 = vadd.f32 %v1245_v19, %v1072_v13  ;;  %v1295_v27 = vadd.f32 %v1258_v21, %v1073_v14  ;;  %v1074_v19 = vld [vmem:[#allocation3 + $0x70] sm:$0xff] }
 0x36e   :  { %v2596_v31 = vmul.f32 -1.442695, %v1275_v26  ;;  %v2597_v32 = vmul.f32 -1.442695, %v1295_v27 }
 0x370   :  { %3135 = vpow2.f32 %v2596_v31 }
 0x371   :  { %3137 = vpow2.f32 %v2597_v32 }
 0x372   :  { %v1271_v43 = vpop.f32.mrf.mxu2 }
 0x373   :  { %v1247_v47 = vpop.f32.mrf.mxu0  ;;  %v1260_v20 = vpop.f32.mrf.mxu1  ;;  %v1315_v17 = vadd.f32 %v3331_v16, %v1271_v43  ;;  %v3059_v43 = vld [vmem:[#allocation6 + $0xb8] sm:$0xf0] }
 0x374   :  { %v2791_v45 = vor.u32 %v3059_v43, %v2790_v38  ;;  %v3054_v47 = vld [vmem:[#allocation6 + $0x94] sm:$0xf]  ;;  %v3039_v38 = vld [vmem:[#allocation6 + $0x1c] sm:$0xf]  ;;  %v2712_v43 = vld [vmem:[#allocation6 + $0x24] sm:$0xf0] }
 0x375   :  { %v2775_v52 = vor.u32 %v3054_v47, %v2772_v48  ;;  %v2711_v47 = vor.u32 %v3040_v41, %v2710_v40  ;;  %v3079_v40 = vld [vmem:[#allocation6 + $0x98] sm:$0xf0]  ;;  %v3078_v41 = vld [vmem:[#allocation6 + $0x94] sm:$0xf] }
 0x376   :  { %v3136_v57 = vpop.eup %3135  ;;  %1770 = vmatpush.bf16.msrb.mxu0 %v2791_v45 }
 0x377   :  { %v3138_v61 = vpop.eup %3137  ;;  %v1279_v63 = vadd.f32 1.0, %v3136_v57  ;;  %1758 = vmatpush.bf16.msra.mxu3 %v2775_v52  ;;  %v2759_v57 = vor.u32 %v3052_v54, %v2758_v30  ;;  %v3036_v52 = vld [vmem:[#allocation6 + $0x4] sm:$0xf]  ;;  %v2706_v30 = vld [vmem:[#allocation6 + $0x8] sm:$0xf] }
 0x378   :  { %v1299_v2 = vadd.f32 1.0, %v3138_v61  ;;  %v2767_v61 = vor.u32 %v3053_v55, %v2766_v59  ;;  %v3038_v54 = vld [vmem:[#allocation6 + $0x10] sm:$0xf0] }
 0x379   :  { %3139 = vrcp.f32 %v1279_v63  ;;  %v1291_v9 = vand.u32 2147483648, %v1279_v63  ;;  %v1289_v11 = vand.u32 2147483647, %v1279_v63  ;;  %vm1285_vm1 = vweird.f32 %v1279_v63 }
 0x37a   :  { %3141 = vrcp.f32 %v1299_v2  ;;  %v1273_v62 = vpop.f32.mrf.mxu2  ;;  %v1311_v22 = vand.u32 2147483648, %v1299_v2  ;;  %vm1305_vm5 = vweird.f32 %v1299_v2  ;;  %v1309_v24 = vand.u32 2147483647, %v1299_v2  ;;  %1771 = vmatpush.bf16.msrb.mxu0 %v2779_v49 }
 0x37b   :  { %v1292_v14 = vor.u32 1.1754944e-38, %v1291_v9  ;;  %vm1290_vm3 = vcmp.eq.f32.partialorder %v1289_v11, 8.507059e+37  ;;  %1759 = vmatpush.bf16.msra.mxu3 %v2763_v60  ;;  %v3049_v62 = vld [vmem:[#allocation6 + $0x68] sm:$0xf0]  ;;  %v1326_v11 = vld [vmem:[#allocation3 + $0x78] sm:$0xff]  ;;  %v2707_v59 = vor.u32 %v3038_v54, %v2706_v30 }
 0x37c   :  { %v1312_v27 = vor.u32 1.1754944e-38, %v1311_v22  ;;  %vm1310_vm7 = vcmp.eq.f32.partialorder %v1309_v24, 8.507059e+37 }
 0x37e   :  { %1772 = vmatpush.bf16.msrb.mxu0 %v2767_v61 }
 0x37f   :  { %v3140_v3 = vpop.eup %3139 }
 0x380   :  { %v3142_v4 = vpop.eup %3141  ;;  %v1281_v5 = vmul.f32 %v3140_v3, %v1279_v63  ;;  %vm1286_vm0 = vweird.f32 %v3140_v3 }
 0x381   :  { %v1301_v6 = vmul.f32 %v3142_v4, %v1299_v2  ;;  %vm1287_vm2 = vmor %vm1285_vm1, %vm1286_vm0  ;;  %vm1306_vm4 = vweird.f32 %v3142_v4  ;;  %v2746_v2 = vld [vmem:[#allocation6 + $0x60] sm:$0xf] }
 0x382   :  { %v1282_v7 = vsub.f32 1.0, %v1281_v5  ;;  %vm1307_vm6 = vmor %vm1305_vm5, %vm1306_vm4  ;;  %v2748_v5 = vld [vmem:[#allocation6 + $0x6c] sm:$0xf0] }
 0x383   :  { %v1302_v8 = vsub.f32 1.0, %v1301_v6  ;;  %v2754_v6 = vld [vmem:[#allocation6 + $0x68] sm:$0xf] }
 0x384   :  { %v1283_v10 = vmul.f32 %v3140_v3, %v1282_v7  ;;  %v3050_v7 = vld [vmem:[#allocation6 + $0x70] sm:$0xf0] }
 0x385   :  { %v1303_v12 = vmul.f32 %v3142_v4, %v1302_v8 }
 0x386   :  { %v1284_v13 = vadd.f32 %v3140_v3, %v1283_v10  ;;  %v2755_v10 = vor.u32 %v3050_v7, %v2754_v6 }
 0x387   :  { %v1304_v18 = vadd.f32 %v3142_v4, %v1303_v12  ;;  %v2734_v12 = vld [vmem:[#allocation6 + $0x48] sm:$0xf] }
 0x388   :  { %v1288_v15 = vsel %vm1287_vm2, %v3140_v3, %v1284_v13  ;;  %v3048_v3 = vld [vmem:[#allocation6 + $0x64] sm:$0xf]  ;;  %1773 = vmatpush.bf16.msrb.mxu0 %v2755_v10  ;;  %v3046_v13 = vld [vmem:[#allocation6 + $0x50] sm:$0xf0] }
 0x389   :  { %v1293_v21 = vsel %vm1290_vm3, %v1292_v14, %v1288_v15  ;;  %v1308_v26 = vsel %vm1307_vm6, %v3142_v4, %v1304_v18  ;;  %v2747_v4 = vor.u32 %v3049_v62, %v2746_v2  ;;  %v2751_v9 = vor.u32 %v3048_v3, %v2748_v5  ;;  %v3045_v14 = vld [vmem:[#allocation6 + $0x4c] sm:$0xf]  ;;  %v2736_v18 = vld [vmem:[#allocation6 + $0x54] sm:$0xf0] }
 0x38a   :  { %v1316_v23 = vmul.f32 %v1315_v17, %v1293_v21  ;;  %v1313_v28 = vsel %vm1310_vm7, %v1312_v27, %v1308_v26  ;;  %v2735_v17 = vor.u32 %v3046_v13, %v2734_v12  ;;  %v3047_v21 = vld [vmem:[#allocation6 + $0x58] sm:$0xf0]  ;;  %v3042_v27 = vld [vmem:[#allocation6 + $0x34] sm:$0xf]  ;;  %v1328_v13 = vld [vmem:[#allocation3 + $0x88] sm:$0xff] }
 0x38b   :  { %v1319_v29 = vsub.f32 1.0, %v1313_v28  ;;  %v1321_v33 = vmul.f32 %v1313_v28, %v3323_v42  ;;  %v2770_v42 = vld [vmem:[#allocation6 + $0x90] sm:$0xf]  ;;  %1760 = vmatpush.bf16.msra.mxu3 %v2751_v9  ;;  %v3043_v26 = vld [vmem:[#allocation6 + $0x38] sm:$0xf0] }
 0x38c   :  { %v1317_v25 = vadd.f32 %v1316_v23, %v1074_v19  ;;  %v2771_v20 = vor.u32 %v3055_v46, %v2770_v42  ;;  %v2742_v19 = vld [vmem:[#allocation6 + $0x50] sm:$0xf]  ;;  %v2739_v23 = vor.u32 %v3045_v14, %v2736_v18  ;;  %v3041_v42 = vld [vmem:[#allocation6 + $0x28] sm:$0xf0] }
 0x38d   :  { %v2743_v24 = vor.u32 %v3047_v21, %v2742_v19  ;;  %v2719_v48 = vor.u32 %v3041_v42, %v2718_v44  ;;  %v2876_v44 = vld [vmem:[#allocation6 + $0x98] sm:$0xf] }
 0x38e   :  { %3143 = vtanh.f32 %v1317_v25  ;;  %1745 = vmatpush.bf16.msra.mxu2 %v2771_v20  ;;  %v2722_v25 = vld [vmem:[#allocation6 + $0x30] sm:$0xf]  ;;  %v2715_v20 = vor.u32 %v3039_v38, %v2712_v43  ;;  %v2870_v43 = vld [vmem:[#allocation6 + $0x9c] sm:$0xf0] }
 0x38f   :  { %1761 = vmatpush.bf16.msra.mxu3 %v2739_v23  ;;  %1774 = vmatpush.bf16.msrb.mxu0 %v2743_v24  ;;  %v2873_v42 = vor.u32 %v3078_v41, %v2870_v43  ;;  %v2796_v41 = vld [vmem:[#allocation6] sm:$0xf]  ;;  %v3060_v43 = vld [vmem:[#allocation6 + $0x4] sm:$0xf] }
 0x392   :  { %1746 = vmatpush.bf16.msra.mxu2 %v2759_v57 }
 0x394   :  { %v3144_v31 = vpop.eup %3143 }
 0x395   :  { %v1320_v32 = vmul.f32 %v3144_v31, %v1319_v29  ;;  %v2723_v29 = vor.u32 %v3043_v26, %v2722_v25  ;;  %v2724_v31 = vld [vmem:[#allocation6 + $0x3c] sm:$0xf0] }
 0x396   :  { %1747 = vmatpush.bf16.msra.mxu2 %v2747_v4  ;;  %v2727_v37 = vor.u32 %v3042_v27, %v2724_v31  ;;  %v3081_v31 = vld [vmem:[#allocation6 + $0xac] sm:$0xf] }
 0x397   :  { %v3335_v34 = vadd.f32 %v1321_v33, %v1320_v32  ;;  %v2730_v32 = vld [vmem:[#allocation6 + $0x38] sm:$0xf]  ;;  %v3044_v33 = vld [vmem:[#allocation6 + $0x40] sm:$0xf0] }
 0x398   :  { %v2731_v39 = vor.u32 %v3044_v33, %v2730_v32  ;;  %1762 = vmatpush.bf16.msra.mxu3 %v2727_v37  ;;  %v2882_v33 = vld [vmem:[#allocation6 + $0xb4] sm:$0xf0] }
 0x399   :  { %1324 = vst [vmem:[#allocation8 + $0x20] sm:$0xff] %v3335_v34  ;;  %v1329_v35 = vpack.c.bf16 %v3335_v34, %v3335_v34  ;;  %v2885_v37 = vor.u32 %v3081_v31, %v2882_v33  ;;  %v2808_v31 = vld [vmem:[#allocation6 + $0x18] sm:$0xf]  ;;  %v3063_v33 = vld [vmem:[#allocation6 + $0x1c] sm:$0xf] }
 0x39a   :  { %1748 = vmatpush.bf16.msra.mxu2 %v2735_v17  ;;  %1775 = vmatpush.bf16.msrb.mxu0 %v2731_v39 }
 0x39b   :  { %1498 = vmatmul.bf16.vlgmr.msrb.gmra.mxu3 %v1329_v35  ;;  %1511 = vmatmul.bf16.vlgmr.msra.gmra.mxu0 %v1329_v35 }
 0x39c   :  { %1524 = vmatmul.bf16.vlgmr.msra.gmra.mxu1 %v1329_v35  ;;  %1763 = vmatpush.bf16.msra.mxu3 %v2715_v20  ;;  %v3076_v20 = vld [vmem:[#allocation6 + $0x80] sm:$0xf0] }
 0x39e   :  { %1749 = vmatpush.bf16.msra.mxu2 %v2723_v29  ;;  %1776 = vmatpush.bf16.msrb.mxu0 %v2719_v48  ;;  %v3082_v29 = vld [vmem:[#allocation6 + $0xb0] sm:$0xf0]  ;;  %v3075_v48 = vld [vmem:[#allocation6 + $0x7c] sm:$0xf] }
 0x3a2   :  { %1750 = vmatpush.bf16.msra.mxu2 %v2711_v47  ;;  %1777 = vmatpush.bf16.msrb.mxu0 %v2707_v59  ;;  %v2856_v47 = vld [vmem:[#allocation6 + $0x78] sm:$0xf] }
 0x3a3   :  { %v2857_v50 = vor.u32 %v3076_v20, %v2856_v47  ;;  %v3062_v47 = vld [vmem:[#allocation6 + $0x10] sm:$0xf0] }
 0x3a6   :  { %1751 = vmatpush.bf16.msra.mxu2 %v2699_v56  ;;  %v2844_v56 = vld [vmem:[#allocation6 + $0x60] sm:$0xf] }
 0x3aa   :  { %2011 = vmatpush.bf16.msrb.mxu2 %v2885_v37  ;;  %v3065_v37 = vld [vmem:[#allocation6 + $0x28] sm:$0xf0] }
 0x3ae   :  { %2012 = vmatpush.bf16.msrb.mxu2 %v2873_v42  ;;  %v2798_v42 = vld [vmem:[#allocation6 + $0xc] sm:$0xf0] }
 0x418   :  { %v1512_v63 = vpop.f32.mrf.mxu0 }
 0x419   :  { %v1549_v0 = vadd.f32 %v1512_v63, %v1327_v53  ;;  %v3340_v1 = vpop.f32.mrf.mxu1  ;;  %v2700_v53 = vld [vmem:[#allocation6 + $0xc] sm:$0xf0] }
 0x41a   :  { %v2703_v58 = vor.u32 %v3036_v52, %v2700_v53  ;;  %v1569_v9 = vadd.f32 %v3331_v16, %v3340_v1  ;;  %v2864_v52 = vld [vmem:[#allocation6 + $0x80] sm:$0xf]  ;;  %v2861_v53 = vor.u32 %v3075_v48, %v2858_v51 }
 0x41b   :  { %v2695_v8 = vmul.f32 -1.442695, %v1549_v0 }
 0x41c   :  { %1764 = vmatpush.bf16.msra.mxu3 %v2703_v58  ;;  %2013 = vmatpush.bf16.msrb.mxu2 %v2861_v53  ;;  %v3072_v58 = vld [vmem:[#allocation6 + $0x64] sm:$0xf] }
 0x41d   :  { %3145 = vpow2.f32 %v2695_v8 }
 0x41e   :  { %v1499_v15 = vpop.f32.mrf.mxu3 }
 0x41f   :  { %v1529_v22 = vadd.f32 %v1499_v15, %v1326_v11 }
 0x420   :  { %v1514_v28 = vpop.f32.mrf.mxu0 }
 0x421   :  { %v2694_v35 = vmul.f32 -1.442695, %v1529_v22  ;;  %v1527_v36 = vpop.f32.mrf.mxu1  ;;  %v2880_v28 = vld [vmem:[#allocation6 + $0xa8] sm:$0xf] }
 0x422   :  { %v2881_v32 = vor.u32 %v3082_v29, %v2880_v28  ;;  %v3083_v36 = vld [vmem:[#allocation6 + $0xb8] sm:$0xf0] }
 0x423   :  { %v3146_v45 = vpop.eup %3145  ;;  %3147 = vpow2.f32 %v2694_v35  ;;  %v2888_v35 = vld [vmem:[#allocation6 + $0xb0] sm:$0xf] }
 0x424   :  { %v1553_v46 = vadd.f32 1.0, %v3146_v45  ;;  %v2889_v39 = vor.u32 %v3083_v36, %v2888_v35  ;;  %1998 = vmatpush.bf16.msrb.mxu1 %v2881_v32  ;;  %v3080_v45 = vld [vmem:[#allocation6 + $0xa0] sm:$0xf0]  ;;  %v2810_v35 = vld [vmem:[#allocation6 + $0x24] sm:$0xf0] }
 0x425   :  { %v3064_v32 = vld [vmem:[#allocation6 + $0x20] sm:$0xf0]  ;;  %v2816_v36 = vld [vmem:[#allocation6 + $0x20] sm:$0xf] }
 0x426   :  { %v1501_v49 = vpop.f32.mrf.mxu3  ;;  %3149 = vrcp.f32 %v1553_v46  ;;  %v1565_v14 = vand.u32 2147483648, %v1553_v46  ;;  %vm1559_vm13 = vweird.f32 %v1553_v46  ;;  %v1563_v17 = vand.u32 2147483647, %v1553_v46  ;;  %2024 = vmatpush.bf16.msrb.mxu3 %v2889_v39 }
 0x427   :  { %v3077_v49 = vld [vmem:[#allocation6 + $0x88] sm:$0xf0]  ;;  %v2809_v39 = vor.u32 %v3064_v32, %v2808_v31 }
 0x428   :  { %v1566_v21 = vor.u32 1.1754944e-38, %v1565_v14  ;;  %vm1564_vm15 = vcmp.eq.f32.partialorder %v1563_v17, 8.507059e+37  ;;  %v2865_v30 = vor.u32 %v3077_v49, %v2864_v52  ;;  %v2820_v17 = vld [vmem:[#allocation6 + $0x30] sm:$0xf] }
 0x429   :  { %v3148_v57 = vpop.eup %3147 }
 0x42a   :  { %v1533_v55 = vadd.f32 1.0, %v3148_v57  ;;  %v3073_v57 = vld [vmem:[#allocation6 + $0x68] sm:$0xf0] }
 0x42b   :  { %v2845_v59 = vor.u32 %v3073_v57, %v2844_v56 }
 0x42c   :  { %3151 = vrcp.f32 %v1533_v55  ;;  %v3150_v60 = vpop.eup %3149  ;;  %v1545_v3 = vand.u32 2147483648, %v1533_v55  ;;  %v1543_v5 = vand.u32 2147483647, %v1533_v55  ;;  %vm1539_vm9 = vweird.f32 %v1533_v55 }
 0x42d   :  { %v1555_v61 = vmul.f32 %v3150_v60, %v1553_v46  ;;  %vm1560_vm12 = vweird.f32 %v3150_v60  ;;  %v2877_v46 = vor.u32 %v3080_v45, %v2876_v44 }
 0x42e   :  { %v1546_v8 = vor.u32 1.1754944e-38, %v1545_v3  ;;  %vm1544_vm11 = vcmp.eq.f32.partialorder %v1543_v5, 8.507059e+37  ;;  %vm1561_vm14 = vmor %vm1559_vm13, %vm1560_vm12  ;;  %v2832_v3 = vld [vmem:[#allocation6 + $0x48] sm:$0xf]  ;;  %v3069_v5 = vld [vmem:[#allocation6 + $0x4c] sm:$0xf] }
 0x42f   :  { %v1556_v2 = vsub.f32 1.0, %v1555_v61  ;;  %2025 = vmatpush.bf16.msrb.mxu3 %v2877_v46  ;;  %v3074_v61 = vld [vmem:[#allocation6 + $0x70] sm:$0xf0]  ;;  %v2804_v46 = vld [vmem:[#allocation6 + $0x8] sm:$0xf] }
 0x430   :  { %v2805_v51 = vor.u32 %v3062_v47, %v2804_v46 }
 0x431   :  { %v1557_v6 = vmul.f32 %v3150_v60, %v1556_v2  ;;  %v1580_v2 = vld [vmem:[#allocation3 + $0x90] sm:$0xff] }
 0x432   :  { %v3152_v63 = vpop.eup %3151 }
 0x433   :  { %v1535_v0 = vmul.f32 %v3152_v63, %v1533_v55  ;;  %vm1540_vm8 = vweird.f32 %v3152_v63  ;;  %v1558_v11 = vadd.f32 %v3150_v60, %v1557_v6  ;;  %2026 = vmatpush.bf16.msrb.mxu3 %v2865_v30  ;;  %v2846_v55 = vld [vmem:[#allocation6 + $0x6c] sm:$0xf0] }
 0x434   :  { %vm1541_vm10 = vmor %vm1539_vm9, %vm1540_vm8 }
 0x435   :  { %v1536_v62 = vsub.f32 1.0, %v1535_v0  ;;  %v1562_v19 = vsel %vm1561_vm14, %v3150_v60, %v1558_v11  ;;  %v2852_v60 = vld [vmem:[#allocation6 + $0x68] sm:$0xf]  ;;  %v3071_v11 = vld [vmem:[#allocation6 + $0x58] sm:$0xf0] }
 0x436   :  { %v1567_v22 = vsel %vm1564_vm15, %v1566_v21, %v1562_v19  ;;  %v2853_v0 = vor.u32 %v3074_v61, %v2852_v60  ;;  %v3066_v19 = vld [vmem:[#allocation6 + $0x34] sm:$0xf] }
 0x437   :  { %v1537_v4 = vmul.f32 %v3152_v63, %v1536_v62  ;;  %v1573_v23 = vsub.f32 1.0, %v1567_v22  ;;  %v1575_v25 = vmul.f32 %v1567_v22, %v3335_v34  ;;  %v2868_v34 = vld [vmem:[#allocation6 + $0x90] sm:$0xf]  ;;  %v1581_v62 = vld [vmem:[#allocation3 + $0x98] sm:$0xff]  ;;  %v2822_v22 = vld [vmem:[#allocation6 + $0x3c] sm:$0xf0] }
 0x438   :  { %v2869_v38 = vor.u32 %v3079_v40, %v2868_v34  ;;  %2027 = vmatpush.bf16.msrb.mxu3 %v2853_v0  ;;  %v2825_v28 = vor.u32 %v3066_v19, %v2822_v22  ;;  %v2813_v34 = vor.u32 %v3063_v33, %v2810_v35  ;;  %v2817_v40 = vor.u32 %v3065_v37, %v2816_v36  ;;  %v1834_v22 = vld [vmem:[#allocation3 + $0xa8] sm:$0xff] }
 0x439   :  { %v1538_v7 = vadd.f32 %v3152_v63, %v1537_v4  ;;  %v3070_v4 = vld [vmem:[#allocation6 + $0x50] sm:$0xf0] }
 0x43a   :  { %1999 = vmatpush.bf16.msrb.mxu1 %v2869_v38  ;;  %v3061_v38 = vld [vmem:[#allocation6 + $0x8] sm:$0xf0] }
 0x43b   :  { %v1542_v10 = vsel %vm1541_vm10, %v3152_v63, %v1538_v7  ;;  %v2849_v63 = vor.u32 %v3072_v58, %v2846_v55  ;;  %v2797_v20 = vor.u32 %v3061_v38, %v2796_v41 }
 0x43c   :  { %v1547_v12 = vsel %vm1544_vm11, %v1546_v8, %v1542_v10  ;;  %v2833_v8 = vor.u32 %v3070_v4, %v2832_v3  ;;  %v2840_v10 = vld [vmem:[#allocation6 + $0x50] sm:$0xf] }
 0x43d   :  { %v1570_v15 = vmul.f32 %v1569_v9, %v1547_v12  ;;  %2014 = vmatpush.bf16.msrb.mxu2 %v2849_v63  ;;  %v2834_v9 = vld [vmem:[#allocation6 + $0x54] sm:$0xf0] }
 0x43e   :  { %2000 = vmatpush.bf16.msrb.mxu1 %v2857_v50  ;;  %v2837_v14 = vor.u32 %v3069_v5, %v2834_v9  ;;  %v2801_v50 = vor.u32 %v3060_v43, %v2798_v42 }
 0x43f   :  { %v1571_v18 = vadd.f32 %v1570_v15, %v1328_v13  ;;  %v2841_v15 = vor.u32 %v3071_v11, %v2840_v10 }
 0x441   :  { %3153 = vtanh.f32 %v1571_v18  ;;  %v3067_v18 = vld [vmem:[#allocation6 + $0x38] sm:$0xf0]  ;;  %2015 = vmatpush.bf16.msrb.mxu2 %v2837_v14  ;;  %2028 = vmatpush.bf16.msrb.mxu3 %v2841_v15 }
 0x442   :  { %2001 = vmatpush.bf16.msrb.mxu1 %v2845_v59  ;;  %v2821_v21 = vor.u32 %v3067_v18, %v2820_v17 }
 0x445   :  { %2016 = vmatpush.bf16.msrb.mxu2 %v2825_v28 }
 0x446   :  { %2002 = vmatpush.bf16.msrb.mxu1 %v2833_v8 }
 0x447   :  { %v3154_v24 = vpop.eup %3153 }
 0x448   :  { %v1574_v1 = vmul.f32 %v3154_v24, %v1573_v23  ;;  %v2828_v23 = vld [vmem:[#allocation6 + $0x38] sm:$0xf]  ;;  %v3068_v24 = vld [vmem:[#allocation6 + $0x40] sm:$0xf0] }
 0x449   :  { %v2829_v29 = vor.u32 %v3068_v24, %v2828_v23  ;;  %2017 = vmatpush.bf16.msrb.mxu2 %v2813_v34 }
 0x44a   :  { %v3345_v26 = vadd.f32 %v1575_v25, %v1574_v1  ;;  %2003 = vmatpush.bf16.msrb.mxu1 %v2821_v21 }
 0x44b   :  { %2029 = vmatpush.bf16.msrb.mxu3 %v2829_v29 }
 0x44c   :  { %1578 = vst [vmem:[#allocation8 + $0x28] sm:$0xff] %v3345_v26  ;;  %v1583_v27 = vpack.c.bf16 %v3345_v26, %v3345_v26 }
 0x44d   :  { %2018 = vmatpush.bf16.msrb.mxu2 %v2801_v50 }
 0x44e   :  { %1752 = vmatmul.bf16.vlgmr.msra.gmra.mxu2 %v1583_v27  ;;  %1765 = vmatmul.bf16.vlgmr.msra.gmra.mxu3 %v1583_v27 }
 0x44f   :  { %1778 = vmatmul.bf16.vlgmr.msrb.gmra.mxu0 %v1583_v27  ;;  %2004 = vmatpush.bf16.msrb.mxu1 %v2809_v39 }
 0x450   :  { %2030 = vmatpush.bf16.msrb.mxu3 %v2817_v40 }
 0x453   :  { %2005 = vmatpush.bf16.msrb.mxu1 %v2797_v20 }
 0x454   :  { %2031 = vmatpush.bf16.msrb.mxu3 %v2805_v51  ;;  %v1836_v51 = vld [vmem:[#allocation3 + $0xb8] sm:$0xff] }
 0x4cc   :  { %v3350_v54 = vpop.f32.mrf.mxu0 }
 0x4cd   :  { %v1823_v3 = vadd.f32 %v3331_v16, %v3350_v54 }
 0x4d1   :  { %v1753_v6 = vpop.f32.mrf.mxu2  ;;  %v1766_v7 = vpop.f32.mrf.mxu3 }
 0x4d2   :  { %v1783_v12 = vadd.f32 %v1753_v6, %v1580_v2  ;;  %v1803_v13 = vadd.f32 %v1766_v7, %v1581_v62  ;;  %v1582_v7 = vld [vmem:[#allocation3 + $0xa0] sm:$0xff] }
 0x4d4   :  { %v2792_v1 = vmul.f32 -1.442695, %v1783_v12  ;;  %v2793_v25 = vmul.f32 -1.442695, %v1803_v13  ;;  %v1781_v27 = vpop.f32.mrf.mxu0 }
 0x4d6   :  { %3155 = vpow2.f32 %v2792_v1 }
 0x4d7   :  { %3157 = vpow2.f32 %v2793_v25  ;;  %v1835_v25 = vld [vmem:[#allocation3 + $0xb0] sm:$0xff] }
 0x4d9   :  { %v1755_v44 = vpop.f32.mrf.mxu2  ;;  %v1768_v45 = vpop.f32.mrf.mxu3 }
 0x4dc   :  { %v3156_v48 = vpop.eup %3155 }
 0x4dd   :  { %v3158_v52 = vpop.eup %3157  ;;  %v1787_v49 = vadd.f32 1.0, %v3156_v48 }
 0x4de   :  { %v1807_v53 = vadd.f32 1.0, %v3158_v52 }
 0x4df   :  { %3159 = vrcp.f32 %v1787_v49  ;;  %v1799_v55 = vand.u32 2147483648, %v1787_v49  ;;  %v1797_v63 = vand.u32 2147483647, %v1787_v49  ;;  %vm1793_vm1 = vweird.f32 %v1787_v49 }
 0x4e0   :  { %3161 = vrcp.f32 %v1807_v53  ;;  %v1819_v9 = vand.u32 2147483648, %v1807_v53  ;;  %vm1813_vm5 = vweird.f32 %v1807_v53  ;;  %v1817_v10 = vand.u32 2147483647, %v1807_v53 }
 0x4e1   :  { %v1800_v62 = vor.u32 1.1754944e-38, %v1799_v55  ;;  %vm1798_vm3 = vcmp.eq.f32.partialorder %v1797_v63, 8.507059e+37 }
 0x4e2   :  { %v1820_v13 = vor.u32 1.1754944e-38, %v1819_v9  ;;  %vm1818_vm7 = vcmp.eq.f32.partialorder %v1817_v10, 8.507059e+37 }
 0x4e5   :  { %v3160_v30 = vpop.eup %3159 }
 0x4e6   :  { %v3162_v56 = vpop.eup %3161  ;;  %v1789_v57 = vmul.f32 %v3160_v30, %v1787_v49  ;;  %vm1794_vm0 = vweird.f32 %v3160_v30 }
 0x4e7   :  { %v1809_v58 = vmul.f32 %v3162_v56, %v1807_v53  ;;  %vm1795_vm2 = vmor %vm1793_vm1, %vm1794_vm0  ;;  %vm1814_vm4 = vweird.f32 %v3162_v56 }
 0x4e8   :  { %v1790_v59 = vsub.f32 1.0, %v1789_v57  ;;  %vm1815_vm6 = vmor %vm1813_vm5, %vm1814_vm4 }
 0x4e9   :  { %v1810_v60 = vsub.f32 1.0, %v1809_v58 }
 0x4ea   :  { %v1791_v61 = vmul.f32 %v3160_v30, %v1790_v59 }
 0x4eb   :  { %v1811_v0 = vmul.f32 %v3162_v56, %v1810_v60 }
 0x4ec   :  { %v1792_v2 = vadd.f32 %v3160_v30, %v1791_v61 }
 0x4ed   :  { %v1812_v6 = vadd.f32 %v3162_v56, %v1811_v0 }
 0x4ee   :  { %v1796_v4 = vsel %vm1795_vm2, %v3160_v30, %v1792_v2 }
 0x4ef   :  { %v1801_v5 = vsel %vm1798_vm3, %v1800_v62, %v1796_v4  ;;  %v1816_v12 = vsel %vm1815_vm6, %v3162_v56, %v1812_v6 }
 0x4f0   :  { %v1824_v8 = vmul.f32 %v1823_v3, %v1801_v5  ;;  %v1821_v14 = vsel %vm1818_vm7, %v1820_v13, %v1816_v12 }
 0x4f1   :  { %v1827_v15 = vsub.f32 1.0, %v1821_v14  ;;  %v1829_v18 = vmul.f32 %v1821_v14, %v3345_v26 }
 0x4f2   :  { %v1825_v11 = vadd.f32 %v1824_v8, %v1582_v7 }
 0x4f4   :  { %3163 = vtanh.f32 %v1825_v11 }
 0x4fa   :  { %v3164_v17 = vpop.eup %3163 }
 0x4fb   :  { %v1828_v54 = vmul.f32 %v3164_v17, %v1827_v15 }
 0x4fd   :  { %v3355_v19 = vadd.f32 %v1829_v18, %v1828_v54 }
 0x4ff   :  { %1832 = vst [vmem:[#allocation8 + $0x30] sm:$0xff] %v3355_v19  ;;  %v1837_v21 = vpack.c.bf16 %v3355_v19, %v3355_v19 }
 0x501   :  { %2006 = vmatmul.bf16.vlgmr.msrb.gmra.mxu1 %v1837_v21  ;;  %2019 = vmatmul.bf16.vlgmr.msrb.gmra.mxu2 %v1837_v21 }
 0x502   :  { %2032 = vmatmul.bf16.vlgmr.msrb.gmra.mxu3 %v1837_v21 }
 0x57e   :  { %v2007_v23 = vpop.f32.mrf.mxu1 }
 0x57f   :  { %v2037_v24 = vadd.f32 %v2007_v23, %v1834_v22 }
 0x581   :  { %v2890_v1 = vmul.f32 -1.442695, %v2037_v24 }
 0x583   :  { %3165 = vpow2.f32 %v2890_v1 }
 0x584   :  { %v2020_v27 = vpop.f32.mrf.mxu2 }
 0x585   :  { %v2057_v28 = vadd.f32 %v2020_v27, %v1835_v25  ;;  %v2033_v29 = vpop.f32.mrf.mxu3 }
 0x586   :  { %v2009_v26 = vpop.f32.mrf.mxu1  ;;  %v2077_v50 = vadd.f32 %v3331_v16, %v2033_v29 }
 0x587   :  { %v2891_v31 = vmul.f32 -1.442695, %v2057_v28 }
 0x589   :  { %v3166_v32 = vpop.eup %3165  ;;  %3167 = vpow2.f32 %v2891_v31 }
 0x58a   :  { %v2041_v33 = vadd.f32 1.0, %v3166_v32 }
 0x58c   :  { %3169 = vrcp.f32 %v2041_v33  ;;  %v2022_v35 = vpop.f32.mrf.mxu2  ;;  %v2053_v38 = vand.u32 2147483648, %v2041_v33  ;;  %v2051_v44 = vand.u32 2147483647, %v2041_v33  ;;  %vm2047_vm9 = vweird.f32 %v2041_v33 }
 0x58d   :  { %v2035_v36 = vpop.f32.mrf.mxu3 }
 0x58e   :  { %v2054_v47 = vor.u32 1.1754944e-38, %v2053_v38  ;;  %vm2052_vm11 = vcmp.eq.f32.partialorder %v2051_v44, 8.507059e+37 }
 0x58f   :  { %v3168_v37 = vpop.eup %3167 }
 0x590   :  { %v2061_v39 = vadd.f32 1.0, %v3168_v37 }
 0x592   :  { %v3170_v34 = vpop.eup %3169  ;;  %3171 = vrcp.f32 %v2061_v39  ;;  %v2073_v53 = vand.u32 2147483648, %v2061_v39  ;;  %v2071_v56 = vand.u32 2147483647, %v2061_v39  ;;  %vm2067_vm13 = vweird.f32 %v2061_v39 }
 0x593   :  { %v2043_v40 = vmul.f32 %v3170_v34, %v2041_v33  ;;  %vm2048_vm8 = vweird.f32 %v3170_v34 }
 0x594   :  { %vm2049_vm10 = vmor %vm2047_vm9, %vm2048_vm8  ;;  %v2074_v59 = vor.u32 1.1754944e-38, %v2073_v53  ;;  %vm2072_vm15 = vcmp.eq.f32.partialorder %v2071_v56, 8.507059e+37 }
 0x595   :  { %v2044_v41 = vsub.f32 1.0, %v2043_v40 }
 0x597   :  { %v2045_v43 = vmul.f32 %v3170_v34, %v2044_v41 }
 0x598   :  { %v3172_v45 = vpop.eup %3171 }
 0x599   :  { %v2063_v42 = vmul.f32 %v3172_v45, %v2061_v39  ;;  %v2046_v46 = vadd.f32 %v3170_v34, %v2045_v43  ;;  %vm2068_vm12 = vweird.f32 %v3172_v45 }
 0x59a   :  { %vm2069_vm14 = vmor %vm2067_vm13, %vm2068_vm12 }
 0x59b   :  { %v2064_v20 = vsub.f32 1.0, %v2063_v42  ;;  %v2050_v48 = vsel %vm2049_vm10, %v3170_v34, %v2046_v46 }
 0x59c   :  { %v2055_v52 = vsel %vm2052_vm11, %v2054_v47, %v2050_v48 }
 0x59d   :  { %v2065_v49 = vmul.f32 %v3172_v45, %v2064_v20  ;;  %v2078_v30 = vmul.f32 %v2077_v50, %v2055_v52 }
 0x59f   :  { %v2066_v57 = vadd.f32 %v3172_v45, %v2065_v49  ;;  %v2079_v58 = vadd.f32 %v2078_v30, %v1836_v51 }
 0x5a1   :  { %v2070_v55 = vsel %vm2069_vm14, %v3172_v45, %v2066_v57  ;;  %3173 = vtanh.f32 %v2079_v58 }
 0x5a2   :  { %v2075_v60 = vsel %vm2072_vm15, %v2074_v59, %v2070_v55 }
 0x5a3   :  { %v2081_v61 = vsub.f32 1.0, %v2075_v60  ;;  %v2083_v0 = vmul.f32 %v2075_v60, %v3355_v19 }
 0x5a7   :  { %v3174_v16 = vpop.eup %3173 }
 0x5a8   :  { %v2082_v63 = vmul.f32 %v3174_v16, %v2081_v61 }
 0x5aa   :  { %v2084_v2 = vadd.f32 %v2083_v0, %v2082_v63 }
 0x5ac   :  { %2086 = vst [vmem:[#allocation8 + $0x38] sm:$0xff] %v2084_v2 }
 0x5ad   :  { %2100 = dma.vmem_to_hbm [thread:$0]  %s2093_s28, 1024, %s2095_s4, [#allocation5], %s3262_s5, %s3262_s5, %s3263_s6  }
 0x5ae   :  { %3252 = dma.done.wait [#allocation5], 1024  }
 0x5af   :  { %3253 = vsyncadd [#allocation5], 4294966272 }
 0x5b0   :  { %2105 = vsyncpa [#allocation4], 1 }
 0x5b1   :  { %2106 = vsyncpa [#allocation7], 1 }
 0x5b2   :  { %2107 = vsyncpa [#allocation5], 1 }

</bundles_post_ra>
